<compile_context>
chip_gen: v5e
topology: v5e:2x2
jax: 0.10.0
libtpu: 0.0.40
codegen_flags: <defaults>
</compile_context>

<pallas_src>
import functools

import jax
import jax.numpy as jnp
from jax import lax
from jax.experimental import pallas as pl
from jax.experimental.pallas import tpu as pltpu


def _se_basic_block_kernel(x_ref, w_ref, bn_scale_ref, bn_bias_ref,
                           w1_ref, w2t_ref, out_ref, xpad_ref, b_ref,
                           *, NB, H, W, Cin, Cout, PAD):
    # x_ref:        (NB*Cin, H*W)        f32   flattened NCHW input rows (lane-dense)
    # w_ref:        (Cout, 9*Cin)        bf16  conv weight, k = (dy*3+dx)*Cin + c
    # bn_scale_ref: (Cout, 1)            f32   folded eval-BN scale
    # bn_bias_ref:  (Cout, 1)            f32   folded eval-BN bias
    # w1_ref:       (Cout, Cr)           f32   SE fc1 (hidden = relu(pooled @ w1))
    # w2t_ref:      (Cout, Cr)           f32   SE fc2 transposed (gate_c = sum_j h_j*w2t[c,j])
    # out_ref:      (NB, Cout, H*W)      f32   lane-dense CHW output
    # xpad_ref:     (NB*Cin, H*W+2*PAD)  bf16  lane-padded staging buffer (fused zero pad)
    # b_ref:        (9*Cin, NB*H*W)      bf16  channel-major im2col buffer
    HW = H * W

    # Cast the input tile to bf16 once and stage it between two lane-aligned zero
    # margins (these margins realize the conv's spatial zero-pad for the row taps;
    # everything written per step is fully overwritten -> no cross-step state).
    xpad_ref[:, 0:PAD] = jnp.zeros((NB * Cin, PAD), jnp.bfloat16)
    xpad_ref[:, PAD + HW:PAD + HW + PAD] = jnp.zeros((NB * Cin, PAD), jnp.bfloat16)
    xpad_ref[:, PAD:PAD + HW] = x_ref[...].astype(jnp.bfloat16)

    # Column-wrap masks in the flattened spatial coordinate (x = f mod W).
    xcoord = lax.broadcasted_iota(jnp.int32, (1, HW), 1) % W
    col_ok = {0: xcoord >= 1, 1: None, 2: xcoord < (W - 1)}

    # Channel-major im2col:
    #   b[(3*dy+dx)*Cin + c, n*HW + y*W + x] = x_pad[n, c, y+dy-1, x+dx-1]
    # Each tap is a static lane-shifted slice of the padded staging buffer (row
    # out-of-range reads land in the zero margins); column wrap-around across image
    # rows is killed by the lane mask.  All stores into b_ref are tile-aligned.
    for dy in range(3):
        for dx in range(3):
            k0 = (3 * dy + dx) * Cin
            s = (dy - 1) * W + (dx - 1)                 # flat-index source shift
            slab = xpad_ref[:, PAD + s:PAD + s + HW]    # (NB*Cin, HW)
            if col_ok[dx] is not None:
                slab = jnp.where(col_ok[dx], slab, jnp.zeros_like(slab))
            for n in range(NB):
                b_ref[k0:k0 + Cin, n * HW:(n + 1) * HW] = \
                    slab[n * Cin:(n + 1) * Cin, :]

    # 3x3 conv (stride 1, pad 1, bias-free) as ONE MXU matmul with K = 9*Cin and the
    # full spatial extent on the lane dimension; f32 accumulation.
    acc = jnp.dot(w_ref[...], b_ref[...], preferred_element_type=jnp.float32)

    # Eval-mode BatchNorm folded to per-channel scale/bias (lane-dense epilogue).
    acc = acc * bn_scale_ref[...] + bn_bias_ref[...]    # (Cout, NB*HW)

    # Squeeze-Excite + final ReLU.  The two tiny M=1 FCs stay on the VPU
    # (broadcast-mul + sublane/lane sums): no MXU round-trips on the serial chain.
    for n in range(NB):
        seg = acc[:, n * HW:(n + 1) * HW]               # (Cout, HW)
        pooled = jnp.mean(seg, axis=1, keepdims=True)   # (Cout, 1)   global avg pool
        hidden = jnp.maximum(
            jnp.sum(pooled * w1_ref[...], axis=0, keepdims=True), 0.0)   # (1, Cr)
        gate = jax.nn.sigmoid(
            jnp.sum(hidden * w2t_ref[...], axis=1, keepdims=True))       # (Cout, 1)
        out_ref[n] = jnp.maximum(seg * gate, 0.0).astype(out_ref.dtype)


def se_basic_block(x_nchw, conv_w, bn_gamma, bn_beta, bn_mean, bn_var,
                   se_w1, se_w2, *, eps=1e-5, out_dtype=jnp.float32):
    """Fused SEBasicBlock forward: conv3x3 -> BatchNorm2d(eval) -> SELayer -> ReLU.

    x_nchw: (N, Cin, H, W) f32 (PyTorch NCHW, consumed directly -- no layout transpose).
    conv_w: (Cout, Cin, 3, 3) PyTorch OIHW.  se_w1: (Cout, Cr).  se_w2: (Cr, Cout).
    Returns (N, Cout, H, W) NCHW.
    """
    N, Cin, H, W = x_nchw.shape
    Cout = conv_w.shape[0]
    Cr = se_w1.shape[1]
    HW = H * W
    pad = ((W + 1 + 127) // 128) * 128      # lane-aligned margin >= W+1

    def vmem_need(nb):
        return (nb * Cin * (HW + 2 * pad) * 2     # bf16 padded staging buffer
                + 9 * Cin * nb * HW * 2           # bf16 im2col buffer
                + 2 * nb * Cin * HW * 4           # double-buffered input block
                + 2 * nb * Cout * HW * 4          # double-buffered output block
                + nb * Cout * HW * 4)             # live f32 accumulator

    # Batch several images per grid step (amortize per-step pipeline overhead,
    # widen the matmul lane dim) under a budget safe for v7x's 64 MiB VMEM.
    NB = 1
    for nb in (8, 4, 2):
        if N % nb == 0 and vmem_need(nb) <= (40 << 20):
            NB = nb
            break

    # Conv weight: (Cout, Cin, 3, 3) -> (Cout, dy, dx, Cin) -> (Cout, 9*Cin), bf16.
    wf = jnp.transpose(conv_w, (0, 2, 3, 1)).reshape(Cout, 9 * Cin).astype(jnp.bfloat16)

    # Fold eval-mode BatchNorm into per-channel scale / bias (f32).
    scale = (bn_gamma / jnp.sqrt(bn_var + eps)).astype(jnp.float32)
    bias = (bn_beta - bn_mean * scale).astype(jnp.float32)
    scale = scale.reshape(Cout, 1)
    bias = bias.reshape(Cout, 1)

    w1 = se_w1.astype(jnp.float32)                     # (Cout, Cr)
    w2t = jnp.transpose(se_w2).astype(jnp.float32)     # (Cout, Cr)

    # Free, contiguous reshape (no transpose): NCHW rows become lane-dense (H*W) rows.
    x_flat = x_nchw.reshape(N * Cin, HW).astype(jnp.float32)

    kernel = functools.partial(_se_basic_block_kernel,
                               NB=NB, H=H, W=W, Cin=Cin, Cout=Cout, PAD=pad)

    cp_kwargs = dict(dimension_semantics=("parallel",))
    need = vmem_need(NB) + (1 << 20)
    if need > (12 << 20):
        # Past demo sizes: raise the scoped-VMEM limit explicitly (defaults are
        # 16/32 MiB) while leaving headroom vs v7x's 64 MiB physical VMEM.
        cp_kwargs["vmem_limit_bytes"] = min(2 * need, 100 << 20)

    out = pl.pallas_call(
        kernel,
        out_shape=jax.ShapeDtypeStruct((N, Cout, HW), out_dtype),
        grid_spec=pltpu.PrefetchScalarGridSpec(
            num_scalar_prefetch=0,
            grid=(N // NB,),
            in_specs=[
                pl.BlockSpec((NB * Cin, HW), lambda i: (i, 0)),
                pl.BlockSpec((Cout, 9 * Cin), lambda i: (0, 0)),
                pl.BlockSpec((Cout, 1), lambda i: (0, 0)),
                pl.BlockSpec((Cout, 1), lambda i: (0, 0)),
                pl.BlockSpec((Cout, Cr), lambda i: (0, 0)),
                pl.BlockSpec((Cout, Cr), lambda i: (0, 0)),
            ],
            out_specs=pl.BlockSpec((NB, Cout, HW), lambda i: (i, 0, 0)),
            scratch_shapes=[
                pltpu.VMEM((NB * Cin, HW + 2 * pad), jnp.bfloat16),
                pltpu.VMEM((9 * Cin, NB * HW), jnp.bfloat16),
            ],
        ),
        compiler_params=pltpu.CompilerParams(**cp_kwargs),
    )(x_flat, wf, scale, bias, w1, w2t)

    # Result is already CHW: only a free reshape back to (N, Cout, H, W).
    return out.reshape(N, Cout, H, W)


def _reference(x_nchw, conv_w, bn_gamma, bn_beta, bn_mean, bn_var, se_w1, se_w2,
               eps=1e-5):
    # Pure-JAX f32 reference mirroring the PyTorch forward (eval BN).
    out = lax.conv_general_dilated(
        x_nchw, conv_w, window_strides=(1, 1), padding=((1, 1), (1, 1)),
        dimension_numbers=("NCHW", "OIHW", "NCHW"))
    scale = bn_gamma / jnp.sqrt(bn_var + eps)
    out = out * scale[None, :, None, None] + (bn_beta - bn_mean * scale)[None, :, None, None]
    pooled = jnp.mean(out, axis=(2, 3))                # (N, Cout)
    hidden = jnp.maximum(pooled @ se_w1, 0.0)          # (N, Cr)
    gate = jax.nn.sigmoid(hidden @ se_w2)              # (N, Cout)
    out = out * gate[:, :, None, None]
    return jnp.maximum(out, 0.0)


if __name__ == "__main__":
    key = jax.random.PRNGKey(0)
    N, Cin, H, W = 2, 16, 16, 16
    Cout, reduction = 32, 16
    Cr = Cout // reduction

    k = jax.random.split(key, 8)
    x = jax.random.normal(k[0], (N, Cin, H, W), jnp.float32)
    conv_w = jax.random.normal(k[1], (Cout, Cin, 3, 3), jnp.float32) * 0.1
    bn_gamma = 1.0 + 0.1 * jax.random.normal(k[2], (Cout,), jnp.float32)
    bn_beta = 0.1 * jax.random.normal(k[3], (Cout,), jnp.float32)
    bn_mean = 0.1 * jax.random.normal(k[4], (Cout,), jnp.float32)
    bn_var = jnp.abs(jax.random.normal(k[5], (Cout,), jnp.float32)) + 0.5
    se_w1 = jax.random.normal(k[6], (Cout, Cr), jnp.float32) * 0.2
    se_w2 = jax.random.normal(k[7], (Cr, Cout), jnp.float32) * 0.2

    out = se_basic_block(x, conv_w, bn_gamma, bn_beta, bn_mean, bn_var, se_w1, se_w2)
    out = jax.block_until_ready(out)

    ref = _reference(x, conv_w, bn_gamma, bn_beta, bn_mean, bn_var, se_w1, se_w2)
    assert out.shape == (N, Cout, H, W)
    err = float(jnp.max(jnp.abs(out - ref)))
    # Tolerance accounts for bf16 conv operands (f32 accumulation / epilogue).
    assert jnp.allclose(out, ref, rtol=2e-2, atol=2e-2), f"max abs err {err}"

    print("KERNEL_OK")
</pallas_src>

<mosaic_0001>
module attributes {stable_mosaic.version = 11 : i64} {
  func.func @_se_basic_block_kernel(%arg0: i32, %arg1: memref<32x256xf32, #tpu.memory_space<vmem>>, %arg2: memref<32x144xbf16, #tpu.memory_space<vmem>>, %arg3: memref<32x1xf32, #tpu.memory_space<vmem>>, %arg4: memref<32x1xf32, #tpu.memory_space<vmem>>, %arg5: memref<32x2xf32, #tpu.memory_space<vmem>>, %arg6: memref<32x2xf32, #tpu.memory_space<vmem>>, %arg7: memref<2x32x256xf32, #tpu.memory_space<vmem>>, %arg8: memref<32x512xbf16, #tpu.memory_space<vmem>>, %arg9: memref<144x512xbf16, #tpu.memory_space<vmem>>) attributes {dimension_semantics = [#tpu.dimension_semantics<parallel>], iteration_bounds = array<i64: 1>, scalar_prefetch = 0 : i64, scratch_operands = 2 : i64, tpu.core_type = #tpu.core_type<tc>, window_params = [{transform_indices = @transform_0, window_bounds = array<i64: 32, 256>}, {pipeline_mode = #tpu.pipeline_mode<synchronous>, transform_indices = @transform_1, window_bounds = array<i64: 32, 144>}, {pipeline_mode = #tpu.pipeline_mode<synchronous>, transform_indices = @transform_2, window_bounds = array<i64: 32, 1>}, {pipeline_mode = #tpu.pipeline_mode<synchronous>, transform_indices = @transform_3, window_bounds = array<i64: 32, 1>}, {pipeline_mode = #tpu.pipeline_mode<synchronous>, transform_indices = @transform_4, window_bounds = array<i64: 32, 2>}, {pipeline_mode = #tpu.pipeline_mode<synchronous>, transform_indices = @transform_5, window_bounds = array<i64: 32, 2>}, {transform_indices = @transform_6, window_bounds = array<i64: 2, 32, 256>}]} {
    %cst = arith.constant 0.000000e+00 : bf16
    %0 = vector.broadcast %cst : bf16 to vector<32x128xbf16>
    %c0 = arith.constant 0 : index
    %c0_0 = arith.constant 0 : index
    %1 = vector.load %arg8[%c0, %c0_0] : memref<32x512xbf16, #tpu.memory_space<vmem>>, vector<32x128xbf16>
    tpu.vector_store %arg8[%c0, %c0_0], %0 {strides = array<i32>} : memref<32x512xbf16, #tpu.memory_space<vmem>>, vector<32x128xbf16>,
    %cst_1 = arith.constant 0.000000e+00 : bf16
    %2 = vector.broadcast %cst_1 : bf16 to vector<32x128xbf16>
    %c0_2 = arith.constant 0 : index
    %c384 = arith.constant 384 : index
    %3 = vector.load %arg8[%c0_2, %c384] : memref<32x512xbf16, #tpu.memory_space<vmem>>, vector<32x128xbf16>
    tpu.vector_store %arg8[%c0_2, %c384], %2 {strides = array<i32>} : memref<32x512xbf16, #tpu.memory_space<vmem>>, vector<32x128xbf16>,
    %c0_3 = arith.constant 0 : index
    %c0_4 = arith.constant 0 : index
    %4 = vector.load %arg1[%c0_3, %c0_4] : memref<32x256xf32, #tpu.memory_space<vmem>>, vector<32x256xf32>
    %5 = arith.truncf %4 : vector<32x256xf32> to vector<32x256xbf16>
    %c0_5 = arith.constant 0 : index
    %c128 = arith.constant 128 : index
    %6 = vector.load %arg8[%c0_5, %c128] : memref<32x512xbf16, #tpu.memory_space<vmem>>, vector<32x256xbf16>
    tpu.vector_store %arg8[%c0_5, %c128], %5 {strides = array<i32>} : memref<32x512xbf16, #tpu.memory_space<vmem>>, vector<32x256xbf16>,
    %7 = tpu.iota {dimensions = array<i32: 1>} : vector<1x256xi32>
    %c16_i32 = arith.constant 16 : i32
    %c0_i32 = arith.constant 0 : i32
    %8 = arith.cmpi eq, %c16_i32, %c0_i32 : i32
    %c1_i32 = arith.constant 1 : i32
    %9 = arith.select %8, %c1_i32, %c16_i32 : i32
    %10 = vector.broadcast %9 : i32 to vector<1x256xi32>
    %11 = arith.remsi %7, %10 : vector<1x256xi32>
    %c0_i32_6 = arith.constant 0 : i32
    %12 = vector.broadcast %c0_i32_6 : i32 to vector<1x256xi32>
    %13 = arith.cmpi ne, %11, %12 : vector<1x256xi32>
    %c0_i32_7 = arith.constant 0 : i32
    %14 = vector.broadcast %c0_i32_7 : i32 to vector<1x256xi32>
    %15 = arith.cmpi slt, %11, %14 : vector<1x256xi32>
    %c0_i32_8 = arith.constant 0 : i32
    %16 = arith.cmpi slt, %9, %c0_i32_8 : i32
    %17 = vector.broadcast %16 : i1 to vector<1x256xi1>
    %18 = vector.broadcast %17 : vector<1x256xi1> to vector<1x256xi1>
    %19 = arith.xori %15, %18 : vector<1x256xi1>
    %20 = arith.andi %19, %13 : vector<1x256xi1>
    %21 = vector.broadcast %9 : i32 to vector<1x256xi32>
    %22 = arith.addi %11, %21 : vector<1x256xi32>
    %23 = arith.select %20, %22, %11 : vector<1x256xi1>, vector<1x256xi32>
    %c1_i32_9 = arith.constant 1 : i32
    %24 = vector.broadcast %c1_i32_9 : i32 to vector<1x256xi32>
    %25 = arith.cmpi sge, %23, %24 : vector<1x256xi32>
    %c15_i32 = arith.constant 15 : i32
    %26 = vector.broadcast %c15_i32 : i32 to vector<1x256xi32>
    %27 = arith.cmpi slt, %23, %26 : vector<1x256xi32>
    %c0_10 = arith.constant 0 : index
    %c111 = arith.constant 111 : index
    %28 = vector.load %arg8[%c0_10, %c111] : memref<32x512xbf16, #tpu.memory_space<vmem>>, vector<32x256xbf16>
    %cst_11 = arith.constant 0.000000e+00 : bf16
    %29 = vector.broadcast %cst_11 : bf16 to vector<32x256xbf16>
    %30 = vector.shape_cast %25 : vector<1x256xi1> to vector<1x256xi1>
    %31 = vector.broadcast %30 : vector<1x256xi1> to vector<32x256xi1>
    %32 = arith.select %31, %28, %29 : vector<32x256xi1>, vector<32x256xbf16>
    %33 = vector.extract_strided_slice %32 {offsets = [0, 0], sizes = [16, 256], strides = [1, 1]} : vector<32x256xbf16> to vector<16x256xbf16>
    %c0_12 = arith.constant 0 : index
    %c0_13 = arith.constant 0 : index
    %34 = vector.load %arg9[%c0_12, %c0_13] : memref<144x512xbf16, #tpu.memory_space<vmem>>, vector<16x256xbf16>
    tpu.vector_store %arg9[%c0_12, %c0_13], %33 {strides = array<i32>} : memref<144x512xbf16, #tpu.memory_space<vmem>>, vector<16x256xbf16>,
    %35 = vector.extract_strided_slice %32 {offsets = [16, 0], sizes = [16, 256], strides = [1, 1]} : vector<32x256xbf16> to vector<16x256xbf16>
    %c0_14 = arith.constant 0 : index
    %c256 = arith.constant 256 : index
    %36 = vector.load %arg9[%c0_14, %c256] : memref<144x512xbf16, #tpu.memory_space<vmem>>, vector<16x256xbf16>
    tpu.vector_store %arg9[%c0_14, %c256], %35 {strides = array<i32>} : memref<144x512xbf16, #tpu.memory_space<vmem>>, vector<16x256xbf16>,
    %c0_15 = arith.constant 0 : index
    %c112 = arith.constant 112 : index
    %37 = vector.load %arg8[%c0_15, %c112] : memref<32x512xbf16, #tpu.memory_space<vmem>>, vector<32x256xbf16>
    %38 = vector.extract_strided_slice %37 {offsets = [0, 0], sizes = [16, 256], strides = [1, 1]} : vector<32x256xbf16> to vector<16x256xbf16>
    %c16 = arith.constant 16 : index
    %c0_16 = arith.constant 0 : index
    %39 = vector.load %arg9[%c16, %c0_16] : memref<144x512xbf16, #tpu.memory_space<vmem>>, vector<16x256xbf16>
    tpu.vector_store %arg9[%c16, %c0_16], %38 {strides = array<i32>} : memref<144x512xbf16, #tpu.memory_space<vmem>>, vector<16x256xbf16>,
    %40 = vector.extract_strided_slice %37 {offsets = [16, 0], sizes = [16, 256], strides = [1, 1]} : vector<32x256xbf16> to vector<16x256xbf16>
    %c16_17 = arith.constant 16 : index
    %c256_18 = arith.constant 256 : index
    %41 = vector.load %arg9[%c16_17, %c256_18] : memref<144x512xbf16, #tpu.memory_space<vmem>>, vector<16x256xbf16>
    tpu.vector_store %arg9[%c16_17, %c256_18], %40 {strides = array<i32>} : memref<144x512xbf16, #tpu.memory_space<vmem>>, vector<16x256xbf16>,
    %c0_19 = arith.constant 0 : index
    %c113 = arith.constant 113 : index
    %42 = vector.load %arg8[%c0_19, %c113] : memref<32x512xbf16, #tpu.memory_space<vmem>>, vector<32x256xbf16>
    %cst_20 = arith.constant 0.000000e+00 : bf16
    %43 = vector.broadcast %cst_20 : bf16 to vector<32x256xbf16>
    %44 = vector.shape_cast %27 : vector<1x256xi1> to vector<1x256xi1>
    %45 = vector.broadcast %44 : vector<1x256xi1> to vector<32x256xi1>
    %46 = arith.select %45, %42, %43 : vector<32x256xi1>, vector<32x256xbf16>
    %47 = vector.extract_strided_slice %46 {offsets = [0, 0], sizes = [16, 256], strides = [1, 1]} : vector<32x256xbf16> to vector<16x256xbf16>
    %c32 = arith.constant 32 : index
    %c0_21 = arith.constant 0 : index
    %48 = vector.load %arg9[%c32, %c0_21] : memref<144x512xbf16, #tpu.memory_space<vmem>>, vector<16x256xbf16>
    tpu.vector_store %arg9[%c32, %c0_21], %47 {strides = array<i32>} : memref<144x512xbf16, #tpu.memory_space<vmem>>, vector<16x256xbf16>,
    %49 = vector.extract_strided_slice %46 {offsets = [16, 0], sizes = [16, 256], strides = [1, 1]} : vector<32x256xbf16> to vector<16x256xbf16>
    %c32_22 = arith.constant 32 : index
    %c256_23 = arith.constant 256 : index
    %50 = vector.load %arg9[%c32_22, %c256_23] : memref<144x512xbf16, #tpu.memory_space<vmem>>, vector<16x256xbf16>
    tpu.vector_store %arg9[%c32_22, %c256_23], %49 {strides = array<i32>} : memref<144x512xbf16, #tpu.memory_space<vmem>>, vector<16x256xbf16>,
    %c0_24 = arith.constant 0 : index
    %c127 = arith.constant 127 : index
    %51 = vector.load %arg8[%c0_24, %c127] : memref<32x512xbf16, #tpu.memory_space<vmem>>, vector<32x256xbf16>
    %cst_25 = arith.constant 0.000000e+00 : bf16
    %52 = vector.broadcast %cst_25 : bf16 to vector<32x256xbf16>
    %53 = vector.shape_cast %25 : vector<1x256xi1> to vector<1x256xi1>
    %54 = vector.broadcast %53 : vector<1x256xi1> to vector<32x256xi1>
    %55 = arith.select %54, %51, %52 : vector<32x256xi1>, vector<32x256xbf16>
    %56 = vector.extract_strided_slice %55 {offsets = [0, 0], sizes = [16, 256], strides = [1, 1]} : vector<32x256xbf16> to vector<16x256xbf16>
    %c48 = arith.constant 48 : index
    %c0_26 = arith.constant 0 : index
    %57 = vector.load %arg9[%c48, %c0_26] : memref<144x512xbf16, #tpu.memory_space<vmem>>, vector<16x256xbf16>
    tpu.vector_store %arg9[%c48, %c0_26], %56 {strides = array<i32>} : memref<144x512xbf16, #tpu.memory_space<vmem>>, vector<16x256xbf16>,
    %58 = vector.extract_strided_slice %55 {offsets = [16, 0], sizes = [16, 256], strides = [1, 1]} : vector<32x256xbf16> to vector<16x256xbf16>
    %c48_27 = arith.constant 48 : index
    %c256_28 = arith.constant 256 : index
    %59 = vector.load %arg9[%c48_27, %c256_28] : memref<144x512xbf16, #tpu.memory_space<vmem>>, vector<16x256xbf16>
    tpu.vector_store %arg9[%c48_27, %c256_28], %58 {strides = array<i32>} : memref<144x512xbf16, #tpu.memory_space<vmem>>, vector<16x256xbf16>,
    %c0_29 = arith.constant 0 : index
    %c128_30 = arith.constant 128 : index
    %60 = vector.load %arg8[%c0_29, %c128_30] : memref<32x512xbf16, #tpu.memory_space<vmem>>, vector<32x256xbf16>
    %61 = vector.extract_strided_slice %60 {offsets = [0, 0], sizes = [16, 256], strides = [1, 1]} : vector<32x256xbf16> to vector<16x256xbf16>
    %c64 = arith.constant 64 : index
    %c0_31 = arith.constant 0 : index
    %62 = vector.load %arg9[%c64, %c0_31] : memref<144x512xbf16, #tpu.memory_space<vmem>>, vector<16x256xbf16>
    tpu.vector_store %arg9[%c64, %c0_31], %61 {strides = array<i32>} : memref<144x512xbf16, #tpu.memory_space<vmem>>, vector<16x256xbf16>,
    %63 = vector.extract_strided_slice %60 {offsets = [16, 0], sizes = [16, 256], strides = [1, 1]} : vector<32x256xbf16> to vector<16x256xbf16>
    %c64_32 = arith.constant 64 : index
    %c256_33 = arith.constant 256 : index
    %64 = vector.load %arg9[%c64_32, %c256_33] : memref<144x512xbf16, #tpu.memory_space<vmem>>, vector<16x256xbf16>
    tpu.vector_store %arg9[%c64_32, %c256_33], %63 {strides = array<i32>} : memref<144x512xbf16, #tpu.memory_space<vmem>>, vector<16x256xbf16>,
    %c0_34 = arith.constant 0 : index
    %c129 = arith.constant 129 : index
    %65 = vector.load %arg8[%c0_34, %c129] : memref<32x512xbf16, #tpu.memory_space<vmem>>, vector<32x256xbf16>
    %cst_35 = arith.constant 0.000000e+00 : bf16
    %66 = vector.broadcast %cst_35 : bf16 to vector<32x256xbf16>
    %67 = vector.shape_cast %27 : vector<1x256xi1> to vector<1x256xi1>
    %68 = vector.broadcast %67 : vector<1x256xi1> to vector<32x256xi1>
    %69 = arith.select %68, %65, %66 : vector<32x256xi1>, vector<32x256xbf16>
    %70 = vector.extract_strided_slice %69 {offsets = [0, 0], sizes = [16, 256], strides = [1, 1]} : vector<32x256xbf16> to vector<16x256xbf16>
    %c80 = arith.constant 80 : index
    %c0_36 = arith.constant 0 : index
    %71 = vector.load %arg9[%c80, %c0_36] : memref<144x512xbf16, #tpu.memory_space<vmem>>, vector<16x256xbf16>
    tpu.vector_store %arg9[%c80, %c0_36], %70 {strides = array<i32>} : memref<144x512xbf16, #tpu.memory_space<vmem>>, vector<16x256xbf16>,
    %72 = vector.extract_strided_slice %69 {offsets = [16, 0], sizes = [16, 256], strides = [1, 1]} : vector<32x256xbf16> to vector<16x256xbf16>
    %c80_37 = arith.constant 80 : index
    %c256_38 = arith.constant 256 : index
    %73 = vector.load %arg9[%c80_37, %c256_38] : memref<144x512xbf16, #tpu.memory_space<vmem>>, vector<16x256xbf16>
    tpu.vector_store %arg9[%c80_37, %c256_38], %72 {strides = array<i32>} : memref<144x512xbf16, #tpu.memory_space<vmem>>, vector<16x256xbf16>,
    %c0_39 = arith.constant 0 : index
    %c143 = arith.constant 143 : index
    %74 = vector.load %arg8[%c0_39, %c143] : memref<32x512xbf16, #tpu.memory_space<vmem>>, vector<32x256xbf16>
    %cst_40 = arith.constant 0.000000e+00 : bf16
    %75 = vector.broadcast %cst_40 : bf16 to vector<32x256xbf16>
    %76 = vector.shape_cast %25 : vector<1x256xi1> to vector<1x256xi1>
    %77 = vector.broadcast %76 : vector<1x256xi1> to vector<32x256xi1>
    %78 = arith.select %77, %74, %75 : vector<32x256xi1>, vector<32x256xbf16>
    %79 = vector.extract_strided_slice %78 {offsets = [0, 0], sizes = [16, 256], strides = [1, 1]} : vector<32x256xbf16> to vector<16x256xbf16>
    %c96 = arith.constant 96 : index
    %c0_41 = arith.constant 0 : index
    %80 = vector.load %arg9[%c96, %c0_41] : memref<144x512xbf16, #tpu.memory_space<vmem>>, vector<16x256xbf16>
    tpu.vector_store %arg9[%c96, %c0_41], %79 {strides = array<i32>} : memref<144x512xbf16, #tpu.memory_space<vmem>>, vector<16x256xbf16>,
    %81 = vector.extract_strided_slice %78 {offsets = [16, 0], sizes = [16, 256], strides = [1, 1]} : vector<32x256xbf16> to vector<16x256xbf16>
    %c96_42 = arith.constant 96 : index
    %c256_43 = arith.constant 256 : index
    %82 = vector.load %arg9[%c96_42, %c256_43] : memref<144x512xbf16, #tpu.memory_space<vmem>>, vector<16x256xbf16>
    tpu.vector_store %arg9[%c96_42, %c256_43], %81 {strides = array<i32>} : memref<144x512xbf16, #tpu.memory_space<vmem>>, vector<16x256xbf16>,
    %c0_44 = arith.constant 0 : index
    %c144 = arith.constant 144 : index
    %83 = vector.load %arg8[%c0_44, %c144] : memref<32x512xbf16, #tpu.memory_space<vmem>>, vector<32x256xbf16>
    %84 = vector.extract_strided_slice %83 {offsets = [0, 0], sizes = [16, 256], strides = [1, 1]} : vector<32x256xbf16> to vector<16x256xbf16>
    %c112_45 = arith.constant 112 : index
    %c0_46 = arith.constant 0 : index
    %85 = vector.load %arg9[%c112_45, %c0_46] : memref<144x512xbf16, #tpu.memory_space<vmem>>, vector<16x256xbf16>
    tpu.vector_store %arg9[%c112_45, %c0_46], %84 {strides = array<i32>} : memref<144x512xbf16, #tpu.memory_space<vmem>>, vector<16x256xbf16>,
    %86 = vector.extract_strided_slice %83 {offsets = [16, 0], sizes = [16, 256], strides = [1, 1]} : vector<32x256xbf16> to vector<16x256xbf16>
    %c112_47 = arith.constant 112 : index
    %c256_48 = arith.constant 256 : index
    %87 = vector.load %arg9[%c112_47, %c256_48] : memref<144x512xbf16, #tpu.memory_space<vmem>>, vector<16x256xbf16>
    tpu.vector_store %arg9[%c112_47, %c256_48], %86 {strides = array<i32>} : memref<144x512xbf16, #tpu.memory_space<vmem>>, vector<16x256xbf16>,
    %c0_49 = arith.constant 0 : index
    %c145 = arith.constant 145 : index
    %88 = vector.load %arg8[%c0_49, %c145] : memref<32x512xbf16, #tpu.memory_space<vmem>>, vector<32x256xbf16>
    %cst_50 = arith.constant 0.000000e+00 : bf16
    %89 = vector.broadcast %cst_50 : bf16 to vector<32x256xbf16>
    %90 = vector.shape_cast %27 : vector<1x256xi1> to vector<1x256xi1>
    %91 = vector.broadcast %90 : vector<1x256xi1> to vector<32x256xi1>
    %92 = arith.select %91, %88, %89 : vector<32x256xi1>, vector<32x256xbf16>
    %93 = vector.extract_strided_slice %92 {offsets = [0, 0], sizes = [16, 256], strides = [1, 1]} : vector<32x256xbf16> to vector<16x256xbf16>
    %c128_51 = arith.constant 128 : index
    %c0_52 = arith.constant 0 : index
    %94 = vector.load %arg9[%c128_51, %c0_52] : memref<144x512xbf16, #tpu.memory_space<vmem>>, vector<16x256xbf16>
    tpu.vector_store %arg9[%c128_51, %c0_52], %93 {strides = array<i32>} : memref<144x512xbf16, #tpu.memory_space<vmem>>, vector<16x256xbf16>,
    %95 = vector.extract_strided_slice %92 {offsets = [16, 0], sizes = [16, 256], strides = [1, 1]} : vector<32x256xbf16> to vector<16x256xbf16>
    %c128_53 = arith.constant 128 : index
    %c256_54 = arith.constant 256 : index
    %96 = vector.load %arg9[%c128_53, %c256_54] : memref<144x512xbf16, #tpu.memory_space<vmem>>, vector<16x256xbf16>
    tpu.vector_store %arg9[%c128_53, %c256_54], %95 {strides = array<i32>} : memref<144x512xbf16, #tpu.memory_space<vmem>>, vector<16x256xbf16>,
    %c0_55 = arith.constant 0 : index
    %c0_56 = arith.constant 0 : index
    %97 = vector.load %arg2[%c0_55, %c0_56] : memref<32x144xbf16, #tpu.memory_space<vmem>>, vector<32x144xbf16>
    %c0_57 = arith.constant 0 : index
    %c0_58 = arith.constant 0 : index
    %98 = vector.load %arg9[%c0_57, %c0_58] : memref<144x512xbf16, #tpu.memory_space<vmem>>, vector<144x512xbf16>
    %cst_59 = arith.constant dense<0.000000e+00> : vector<32x512xf32>
    %99 = tpu.matmul %97, %98, %cst_59 {dimension_numbers = #tpu.dot_dimension_numbers<[1], [0], [0], [1], [0, 0, 1, 1], [], []>} : vector<32x144xbf16>, vector<144x512xbf16>, vector<32x512xf32> -> vector<32x512xf32>
    %c0_60 = arith.constant 0 : index
    %c0_61 = arith.constant 0 : index
    %100 = vector.load %arg3[%c0_60, %c0_61] : memref<32x1xf32, #tpu.memory_space<vmem>>, vector<32x1xf32>
    %101 = vector.broadcast %100 : vector<32x1xf32> to vector<32x512xf32>
    %102 = arith.mulf %99, %101 : vector<32x512xf32>
    %c0_62 = arith.constant 0 : index
    %c0_63 = arith.constant 0 : index
    %103 = vector.load %arg4[%c0_62, %c0_63] : memref<32x1xf32, #tpu.memory_space<vmem>>, vector<32x1xf32>
    %104 = vector.broadcast %103 : vector<32x1xf32> to vector<32x512xf32>
    %105 = arith.addf %102, %104 : vector<32x512xf32>
    %106 = vector.extract_strided_slice %105 {offsets = [0, 0], sizes = [32, 256], strides = [1, 1]} : vector<32x512xf32> to vector<32x256xf32>
    %cst_64 = arith.constant dense<0.000000e+00> : vector<32xf32>
    %107 = vector.multi_reduction <add>, %106, %cst_64 [1] : vector<32x256xf32> to vector<32xf32>
    %108 = vector.shape_cast %107 : vector<32xf32> to vector<32x1xf32>
    %cst_65 = arith.constant 2.560000e+02 : f32
    %109 = vector.broadcast %cst_65 : f32 to vector<32x1xf32>
    %110 = arith.divf %108, %109 : vector<32x1xf32>
    %c0_66 = arith.constant 0 : index
    %c0_67 = arith.constant 0 : index
    %111 = vector.load %arg5[%c0_66, %c0_67] : memref<32x2xf32, #tpu.memory_space<vmem>>, vector<32x2xf32>
    %112 = vector.broadcast %110 : vector<32x1xf32> to vector<32x2xf32>
    %113 = arith.mulf %112, %111 : vector<32x2xf32>
    %cst_68 = arith.constant dense<0.000000e+00> : vector<2xf32>
    %114 = vector.multi_reduction <add>, %113, %cst_68 [0] : vector<32x2xf32> to vector<2xf32>
    %115 = vector.shape_cast %114 : vector<2xf32> to vector<1x2xf32>
    %cst_69 = arith.constant 0.000000e+00 : f32
    %116 = vector.broadcast %cst_69 : f32 to vector<1x2xf32>
    %117 = arith.maximumf %115, %116 : vector<1x2xf32>
    %c0_70 = arith.constant 0 : index
    %c0_71 = arith.constant 0 : index
    %118 = vector.load %arg6[%c0_70, %c0_71] : memref<32x2xf32, #tpu.memory_space<vmem>>, vector<32x2xf32>
    %119 = vector.broadcast %117 : vector<1x2xf32> to vector<32x2xf32>
    %120 = arith.mulf %119, %118 : vector<32x2xf32>
    %cst_72 = arith.constant dense<0.000000e+00> : vector<32xf32>
    %121 = vector.multi_reduction <add>, %120, %cst_72 [1] : vector<32x2xf32> to vector<32xf32>
    %122 = vector.shape_cast %121 : vector<32xf32> to vector<32x1xf32>
    %123 = arith.negf %122 : vector<32x1xf32>
    %124 = math.exp %123 : vector<32x1xf32>
    %cst_73 = arith.constant 1.000000e+00 : f32
    %125 = vector.broadcast %cst_73 : f32 to vector<32x1xf32>
    %126 = arith.addf %125, %124 : vector<32x1xf32>
    %127 = arith.divf %125, %126 : vector<32x1xf32>
    %128 = vector.broadcast %127 : vector<32x1xf32> to vector<32x256xf32>
    %129 = arith.mulf %106, %128 : vector<32x256xf32>
    %cst_74 = arith.constant 0.000000e+00 : f32
    %130 = vector.broadcast %cst_74 : f32 to vector<32x256xf32>
    %131 = arith.maximumf %129, %130 : vector<32x256xf32>
    %c0_75 = arith.constant 0 : index
    %c0_76 = arith.constant 0 : index
    %c0_77 = arith.constant 0 : index
    %132 = vector.load %arg7[%c0_75, %c0_76, %c0_77] : memref<2x32x256xf32, #tpu.memory_space<vmem>>, vector<1x32x256xf32>
    %133 = vector.shape_cast %132 : vector<1x32x256xf32> to vector<32x256xf32>
    %134 = vector.shape_cast %131 : vector<32x256xf32> to vector<1x32x256xf32>
    tpu.vector_store %arg7[%c0_75, %c0_76, %c0_77], %134 {strides = array<i32>} : memref<2x32x256xf32, #tpu.memory_space<vmem>>, vector<1x32x256xf32>,
    %135 = vector.extract_strided_slice %105 {offsets = [0, 256], sizes = [32, 256], strides = [1, 1]} : vector<32x512xf32> to vector<32x256xf32>
    %cst_78 = arith.constant dense<0.000000e+00> : vector<32xf32>
    %136 = vector.multi_reduction <add>, %135, %cst_78 [1] : vector<32x256xf32> to vector<32xf32>
    %137 = vector.shape_cast %136 : vector<32xf32> to vector<32x1xf32>
    %cst_79 = arith.constant 2.560000e+02 : f32
    %138 = vector.broadcast %cst_79 : f32 to vector<32x1xf32>
    %139 = arith.divf %137, %138 : vector<32x1xf32>
    %c0_80 = arith.constant 0 : index
    %c0_81 = arith.constant 0 : index
    %140 = vector.load %arg5[%c0_80, %c0_81] : memref<32x2xf32, #tpu.memory_space<vmem>>, vector<32x2xf32>
    %141 = vector.broadcast %139 : vector<32x1xf32> to vector<32x2xf32>
    %142 = arith.mulf %141, %140 : vector<32x2xf32>
    %cst_82 = arith.constant dense<0.000000e+00> : vector<2xf32>
    %143 = vector.multi_reduction <add>, %142, %cst_82 [0] : vector<32x2xf32> to vector<2xf32>
    %144 = vector.shape_cast %143 : vector<2xf32> to vector<1x2xf32>
    %cst_83 = arith.constant 0.000000e+00 : f32
    %145 = vector.broadcast %cst_83 : f32 to vector<1x2xf32>
    %146 = arith.maximumf %144, %145 : vector<1x2xf32>
    %c0_84 = arith.constant 0 : index
    %c0_85 = arith.constant 0 : index
    %147 = vector.load %arg6[%c0_84, %c0_85] : memref<32x2xf32, #tpu.memory_space<vmem>>, vector<32x2xf32>
    %148 = vector.broadcast %146 : vector<1x2xf32> to vector<32x2xf32>
    %149 = arith.mulf %148, %147 : vector<32x2xf32>
    %cst_86 = arith.constant dense<0.000000e+00> : vector<32xf32>
    %150 = vector.multi_reduction <add>, %149, %cst_86 [1] : vector<32x2xf32> to vector<32xf32>
    %151 = vector.shape_cast %150 : vector<32xf32> to vector<32x1xf32>
    %152 = arith.negf %151 : vector<32x1xf32>
    %153 = math.exp %152 : vector<32x1xf32>
    %cst_87 = arith.constant 1.000000e+00 : f32
    %154 = vector.broadcast %cst_87 : f32 to vector<32x1xf32>
    %155 = arith.addf %154, %153 : vector<32x1xf32>
    %156 = arith.divf %154, %155 : vector<32x1xf32>
    %157 = vector.broadcast %156 : vector<32x1xf32> to vector<32x256xf32>
    %158 = arith.mulf %135, %157 : vector<32x256xf32>
    %cst_88 = arith.constant 0.000000e+00 : f32
    %159 = vector.broadcast %cst_88 : f32 to vector<32x256xf32>
    %160 = arith.maximumf %158, %159 : vector<32x256xf32>
    %c1 = arith.constant 1 : index
    %c0_89 = arith.constant 0 : index
    %c0_90 = arith.constant 0 : index
    %161 = vector.load %arg7[%c1, %c0_89, %c0_90] : memref<2x32x256xf32, #tpu.memory_space<vmem>>, vector<1x32x256xf32>
    %162 = vector.shape_cast %161 : vector<1x32x256xf32> to vector<32x256xf32>
    %163 = vector.shape_cast %160 : vector<32x256xf32> to vector<1x32x256xf32>
    tpu.vector_store %arg7[%c1, %c0_89, %c0_90], %163 {strides = array<i32>} : memref<2x32x256xf32, #tpu.memory_space<vmem>>, vector<1x32x256xf32>,
    return
  }
  func.func @transform_0(%arg0: i32) -> (i32, i32) {
    %c0_i32 = arith.constant 0 : i32
    %c0_i32_0 = arith.constant 0 : i32
    return %arg0, %c0_i32 : i32, i32
  }
  func.func @transform_1(%arg0: i32) -> (i32, i32) {
    %c0_i32 = arith.constant 0 : i32
    %c0_i32_0 = arith.constant 0 : i32
    %c0_i32_1 = arith.constant 0 : i32
    return %c0_i32, %c0_i32_0 : i32, i32
  }
  func.func @transform_2(%arg0: i32) -> (i32, i32) {
    %c0_i32 = arith.constant 0 : i32
    %c0_i32_0 = arith.constant 0 : i32
    %c0_i32_1 = arith.constant 0 : i32
    return %c0_i32, %c0_i32_0 : i32, i32
  }
  func.func @transform_3(%arg0: i32) -> (i32, i32) {
    %c0_i32 = arith.constant 0 : i32
    %c0_i32_0 = arith.constant 0 : i32
    %c0_i32_1 = arith.constant 0 : i32
    return %c0_i32, %c0_i32_0 : i32, i32
  }
  func.func @transform_4(%arg0: i32) -> (i32, i32) {
    %c0_i32 = arith.constant 0 : i32
    %c0_i32_0 = arith.constant 0 : i32
    %c0_i32_1 = arith.constant 0 : i32
    return %c0_i32, %c0_i32_0 : i32, i32
  }
  func.func @transform_5(%arg0: i32) -> (i32, i32) {
    %c0_i32 = arith.constant 0 : i32
    %c0_i32_0 = arith.constant 0 : i32
    %c0_i32_1 = arith.constant 0 : i32
    return %c0_i32, %c0_i32_0 : i32, i32
  }
  func.func @transform_6(%arg0: i32) -> (i32, i32, i32) {
    %c0_i32 = arith.constant 0 : i32
    %c0_i32_0 = arith.constant 0 : i32
    %c0_i32_1 = arith.constant 0 : i32
    return %arg0, %c0_i32, %c0_i32_0 : i32, i32, i32
  }
}

</mosaic_0001>

<bundles_post_ra>
// kernel: tpu_custom_call.1
= control target key start
LH: loop header
LB: loop body
LE: loop exit
PB: predicated region body
PF: predicated region fallthrough
CT: control target
= control target key end

     0   :  { %v51_v0 = vlaneseq  ;;  %v1875_v1 = vmov 0   ;;  %s2692_s0 = inlined_call_operand.vmem [shape: f32[32,256], index: 0, kind: input, shape index: {}]   ;;  %s2693_s1 = inlined_call_operand.vmem [shape: bf16[32,144], index: 1, kind: input, shape index: {}]   ;;  %s2694_s2 = inlined_call_operand.vmem [shape: f32[32,1], index: 2, kind: input, shape index: {}]   ;;  %s2695_s3 = inlined_call_operand.vmem [shape: f32[32,1], index: 3, kind: input, shape index: {}]   ;;  %s2696_s4 = inlined_call_operand.vmem [shape: f32[32,2], index: 4, kind: input, shape index: {}]   ;;  %s2697_s5 = inlined_call_operand.vmem [shape: f32[32,2], index: 5, kind: input, shape index: {}]   ;;  %s2698_s6 = inlined_call_operand.hbm [shape: f32[2,32,256], index: 6, kind: output, shape index: {}]  }
   0x1   :  { %27 = vst [vmem:[#allocation2] sm:$0xf] %v1875_v1  ;;  %1814 = vset.pattern.permute.xlu1 %v1875_v1  ;;  %1813 = vset.pattern.permute.xlu0 %v1875_v1  ;;  %v37_v3 = vld [vmem:[%s2692_s0 + $0x10] sm:$0xff]  ;;  %v38_v4 = vld [vmem:[%s2692_s0 + $0x18] sm:$0xff] }
   0x2   :  { %v52_v2 = vand.u32 127, %v51_v0  ;;  %28 = vst [vmem:[#allocation2 + $0x10] sm:$0xf] %v1875_v1  ;;  %1812 = vset.pattern.permute.xlu2 %v1875_v1 }
   0x3   :  { %29 = vst [vmem:[#allocation2 + $0x20] sm:$0xf] %v1875_v1 }
   0x4   :  { %11 = vsyncpa [#allocation5], 0  ;;  %v53_v5 = vadd.s32 128, %v52_v2  ;;  %v58_v6 = vand.u32 15, %v52_v2  ;;  %30 = vst [vmem:[#allocation2 + $0x30] sm:$0xf] %v1875_v1  ;;  %v1950_v12 = vpack.c.bf16 %v38_v4, %v37_v3  ;;  %v2007_v35 = vunpack.c.l.b16 %v1875_v1 }
   0x5   :  { %v35_v7 = vld [vmem:[%s2692_s0] sm:$0xff]  ;;  %v36_v8 = vld [vmem:[%s2692_s0 + $0x8] sm:$0xff]  ;;  %31 = vst [vmem:[#allocation2 + $0xc] sm:$0xf] %v1875_v1  ;;  %v41_v9 = vld [vmem:[%s2692_s0 + $0x30] sm:$0xff]  ;;  %s1876_s9 = smov 1   ;;  %v2010_v36 = vunpack.c.h.b16 %v1875_v1 }
   0x6   :  { %v42_v10 = vld [vmem:[%s2692_s0 + $0x38] sm:$0xff]  ;;  %v65_v11 = vand.u32 15, %v53_v5  ;;  %vm80_vm0 = vcmp.lt.s32.totalorder %v58_v6, 15  ;;  %32 = vst [vmem:[#allocation2 + $0x1c] sm:$0xf] %v1875_v1  ;;  %v1952_v13 = vpack.c.bf16 %v36_v8, %v35_v7  ;;  %vm1959_vm3 = vcmp.ge.s32.totalorder %v58_v6, 1 }
   0x7   :  { %33 = vst [vmem:[#allocation2 + $0x2c] sm:$0xf] %v1875_v1  ;;  %v1955_v14 = vpack.c.bf16 %v42_v10, %v41_v9  ;;  %s1877_s10 = smov 17   ;;  %s1878_s11 = smov 113   ;;  %v39_v18 = vld [vmem:[%s2692_s0 + $0x20] sm:$0xff]  ;;  %v40_v19 = vld [vmem:[%s2692_s0 + $0x28] sm:$0xff] }
   0x8   :  { %vm81_vm1 = vcmp.lt.s32.totalorder %v65_v11, 15  ;;  %34 = vst [vmem:[#allocation2 + $0x3c] sm:$0xf] %v1875_v1  ;;  %vm1963_vm4 = vcmp.ge.s32.totalorder %v65_v11, 1  ;;  %v1983_v20 = vpack.c.bf16 %v40_v19, %v39_v18  ;;  %s1879_s16 = smov 127   ;;  %s1880_s17 = smov 15  }
   0x9   :  { %vm242_vm2 = vmpackc.low %vm81_vm1, %vm80_vm0  ;;  %48 = vst [vmem:[#allocation2 + $0x14] sm:$0xff] %v1950_v12  ;;  %s1881_s0 = smov 111   ;;  %s1882_s18 = smov 112   ;;  %vm2700_vm6 = vcmask 924672   ;;  %vm99_vm9 = vcmask 908288   ;;  %vm2699_vm1 = vcmask 1039360  }
   0xa   :  { %v243_v15 = vsel %vm242_vm2, 65537, %v1875_v1  ;;  %50 = vst [vmem:[#allocation2 + $0x34] sm:$0xff] %v1955_v14  ;;  %vm94_vm5 = vmpackc.low %vm1963_vm4, %vm1959_vm3  ;;  %s1883_s19 = smov 16   ;;  %s1886_s20 = smov 256  }
   0xb   :  { %420 = vrot.lane.b32.xlu1 %v243_v15, %s1876_s9  ;;  %641 = vrot.lane.b32.xlu0 %v243_v15, %s1877_s10  ;;  %47 = vst [vmem:[#allocation2 + $0x4] sm:$0xff] %v1952_v13  ;;  %v95_v21 = vsel %vm94_vm5, 65537, %v1875_v1 }
   0xc   :  { %244 = vrot.lane.b32.xlu2 %v243_v15, %s1878_s11  ;;  %408 = vst [vmem:[#allocation3 + $0x80] sm:$0xff] %v1952_v13  ;;  %v577_v22 = vld [vmem:[#allocation2 + $0xc] sm:$0xf] }
   0xd   :  { %409 = vst [vmem:[#allocation3 + $0x90] sm:$0xff] %v1950_v12  ;;  %v579_v23 = vld [vmem:[#allocation2 + $0x1c] sm:$0xf]  ;;  %v634_v60 = vld [vmem:[#allocation2 + $0xc] sm:$0xf] }
   0xe   :  { %49 = vst [vmem:[#allocation2 + $0x24] sm:$0xff] %v1983_v20  ;;  %v1772_v24 = vpack.i.bf16 %v579_v23, %v577_v22  ;;  %v581_v25 = vld [vmem:[#allocation2 + $0x2c] sm:$0xf]  ;;  %v636_v61 = vld [vmem:[#allocation2 + $0x1c] sm:$0xf] }
   0xf   :  { %v583_v26 = vld [vmem:[#allocation2 + $0x3c] sm:$0xf]  ;;  %v417_v56 = vld [vmem:[#allocation2 + $0x2c] sm:$0xf] }
  0x10   :  { %v1777_v27 = vpack.i.bf16 %v583_v26, %v581_v25  ;;  %v1999_v29 = vld [vmem:[#allocation2 + $0x10] sm:$0xff]  ;;  %v176_v30 = vld [vmem:[#allocation2 + $0x18] sm:$0xf]  ;;  %v419_v57 = vld [vmem:[#allocation2 + $0x3c] sm:$0xf] }
  0x11   :  { %v323_v22 = vld [vmem:[#allocation2 + $0x18] sm:$0xf] }
  0x12   :  { %v1995_v28 = vld [vmem:[#allocation2] sm:$0xff]  ;;  %v174_v31 = vld [vmem:[#allocation2 + $0x8] sm:$0xf]  ;;  %v237_v5 = vld [vmem:[#allocation2 + $0x38] sm:$0xf] }
  0x13   :  { %328 = vrot.lane.b32.xlu1 %v95_v21, %s1879_s16  ;;  %502 = vrot.lane.b32.xlu0 %v95_v21, %s1880_s17  ;;  %v231_v25 = vld [vmem:[#allocation2 + $0x8] sm:$0xf] }
  0x14   :  { %96 = vrot.lane.b32.xlu2 %v95_v21, %s1881_s0 }
  0x15   :  { %v325_v47 = vld [vmem:[#allocation2 + $0x28] sm:$0xf] }
  0x1b   :  { %1773 = vrot.lane.b32.xlu1 %v1772_v24, %s1882_s18  ;;  %588 = vrot.lane.b32.xlu0 %v1952_v13, %s1882_s18 }
  0x1c   :  { %592 = vrot.lane.b32.xlu2 %v1950_v12, %s1882_s18 }
  0x23   :  { %1778 = vrot.lane.b32.xlu1 %v1777_v27, %s1882_s18  ;;  %613 = vrot.lane.b32.xlu0 %v1983_v20, %s1882_s18 }
  0x24   :  { %617 = vrot.lane.b32.xlu2 %v1955_v14, %s1882_s18 }
  0x2b   :  { %189 = vrot.lane.b32.xlu1 %v1999_v29, %s1883_s19  ;;  %187 = vrot.lane.b32.xlu0 %v174_v31, %s1883_s19  ;;  %v85_v31 = vld [vmem:[#allocation2 + $0x18] sm:$0xf] }
  0x2c   :  { %185 = vrot.lane.b32.xlu2 %v1995_v28, %s1883_s19 }
  0x34   :  { %191 = vrot.lane.b32.xlu2 %v176_v30, %s1883_s19 }
  0x66   :  { %v245_v32 = vpop.permute.xlu2 %244 }
  0x67   :  { %v246_v33 = vrot.slane %v245_v32, 4 }
  0x69   :  { %v248_v34 = vsel %vm2700_vm6, %v246_v33, %v245_v32  ;;  %v256_v54 = vunpack.c.l.b16 %v246_v33  ;;  %v257_v55 = vunpack.c.h.b16 %v246_v33  ;;  %v495_v33 = vld [vmem:[#allocation2 + $0xc] sm:$0xf] }
  0x6a   :  { %v249_v37 = vunpack.c.l.b16 %v248_v34  ;;  %v250_v38 = vunpack.c.h.b16 %v248_v34  ;;  %v497_v34 = vld [vmem:[#allocation2 + $0x1c] sm:$0xf] }
  0x6b   :  { %vm2069_vm3 = vcmp.ne.s32.totalorder %v256_v54, %v2007_v35  ;;  %vm2074_vm4 = vcmp.ne.s32.totalorder %v257_v55, %v2010_v36 }
  0x6c   :  { %vm2013_vm7 = vcmp.ne.s32.totalorder %v249_v37, %v2007_v35  ;;  %vm2018_vm8 = vcmp.ne.s32.totalorder %v250_v38, %v2010_v36 }
  0x6d   :  { %vm2090_vm5 = vmpackc.low %vm2018_vm8, %vm2013_vm7 }
  0x6e   :  { %v97_v41 = vpop.permute.xlu2 %96  ;;  %vm2102_vm7 = vmpackc.low %vm2074_vm4, %vm2069_vm3 }
  0x6f   :  { %v2022_v42 = vrot.slane %v97_v41, 4  ;;  %v264_v38 = vsel %vm2102_vm7, %v231_v25, 0 }
  0x71   :  { %v100_v43 = vsel %vm99_vm9, %v2022_v42, %v97_v41  ;;  %v108_v23 = vunpack.c.l.b16 %v2022_v42  ;;  %v109_v24 = vunpack.c.h.b16 %v2022_v42 }
  0x72   :  { %v101_v44 = vunpack.c.l.b16 %v100_v43  ;;  %v102_v45 = vunpack.c.h.b16 %v100_v43 }
  0x74   :  { %vm2027_vm10 = vcmp.ne.s32.totalorder %v101_v44, %v2007_v35  ;;  %vm2032_vm11 = vcmp.ne.s32.totalorder %v102_v45, %v2010_v36  ;;  %v413_v44 = vld [vmem:[#allocation2 + $0xc] sm:$0xf]  ;;  %v415_v45 = vld [vmem:[#allocation2 + $0x1c] sm:$0xf] }
  0x7d   :  { %v2036_v48 = vpop.permute.xlu1 %420  ;;  %v2038_v49 = vpop.permute.xlu0 %641 }
  0x7e   :  { %v2041_v50 = vrot.slane %v2036_v48, 4  ;;  %v2044_v51 = vrot.slane %v2038_v49, 4 }
  0x80   :  { %v431_v52 = vunpack.c.l.b16 %v2041_v50  ;;  %v432_v53 = vunpack.c.h.b16 %v2041_v50  ;;  %v652_v58 = vunpack.c.l.b16 %v2044_v51  ;;  %v653_v59 = vunpack.c.h.b16 %v2044_v51 }
  0x82   :  { %vm435_vm12 = vcmp.ne.s32.totalorder %v431_v52, %v2007_v35  ;;  %vm436_vm13 = vcmp.ne.s32.totalorder %v432_v53, %v2010_v36  ;;  %vm656_vm15 = vcmp.ne.s32.totalorder %v652_v58, %v2007_v35  ;;  %vm657_vm0 = vcmp.ne.s32.totalorder %v653_v59, %v2010_v36  ;;  %v327_v52 = vld [vmem:[#allocation2 + $0x38] sm:$0xf]  ;;  %v83_v53 = vld [vmem:[#allocation2 + $0x8] sm:$0xf] }
  0x83   :  { %vm2052_vm14 = vmpackc.low %vm436_vm13, %vm435_vm12 }
  0x84   :  { %v443_v63 = vsel %vm2052_vm14, %v417_v56, 0  ;;  %v445_v0 = vsel %vm2052_vm14, %v419_v57, 0  ;;  %vm2064_vm2 = vmpackc.low %vm657_vm0, %vm656_vm15  ;;  %v439_v56 = vsel %vm2052_vm14, %v413_v44, 0  ;;  %v441_v57 = vsel %vm2052_vm14, %v415_v45, 0 }
  0x85   :  { %v329_v1 = vpop.permute.xlu1 %328  ;;  %v2062_v2 = vpop.permute.xlu0 %502  ;;  %v1802_v4 = vpack.i.bf16 %v445_v0, %v443_v63  ;;  %v660_v9 = vsel %vm2064_vm2, %v634_v60, 0  ;;  %v662_v10 = vsel %vm2064_vm2, %v636_v61, 0  ;;  %v1792_v60 = vpack.i.bf16 %v441_v57, %v439_v56  ;;  %v235_v61 = vld [vmem:[#allocation2 + $0x28] sm:$0xf]  ;;  %v499_v63 = vld [vmem:[#allocation2 + $0x2c] sm:$0xf] }
  0x86   :  { %v330_v7 = vrot.slane %v329_v1, 4  ;;  %v2079_v8 = vrot.slane %v2062_v2, 4  ;;  %v1782_v11 = vpack.i.bf16 %v662_v10, %v660_v9  ;;  %v501_v0 = vld [vmem:[#allocation2 + $0x3c] sm:$0xf]  ;;  %vm2702_vm14 = vcmask 121856  }
  0x87   :  { %1803 = vrot.lane.b32.xlu2 %v1802_v4, %s1879_s16  ;;  %v268_v4 = vsel %vm2102_vm7, %v235_v61, 0  ;;  %v180_v10 = vld [vmem:[#allocation2 + $0x38] sm:$0xf] }
  0x88   :  { %v332_v16 = vsel %vm2699_vm1, %v330_v7, %v329_v1  ;;  %v340_v17 = vunpack.c.l.b16 %v330_v7  ;;  %v341_v18 = vunpack.c.h.b16 %v330_v7  ;;  %1783 = vrot.lane.b32.xlu1 %v1782_v11, %s1881_s0  ;;  %v513_v27 = vunpack.c.l.b16 %v2079_v8 }
  0x89   :  { %v333_v19 = vunpack.c.l.b16 %v332_v16  ;;  %v334_v21 = vunpack.c.h.b16 %v332_v16  ;;  %v514_v30 = vunpack.c.h.b16 %v2079_v8  ;;  %v505_v7 = vsel %vm2702_vm14, %v2079_v8, %v2062_v2 }
  0x8a   :  { %vm344_vm8 = vcmp.ne.s32.totalorder %v340_v17, %v2007_v35  ;;  %vm345_vm12 = vcmp.ne.s32.totalorder %v341_v18, %v2010_v36  ;;  %vm517_vm3 = vcmp.ne.s32.totalorder %v513_v27, %v2007_v35  ;;  %v506_v11 = vunpack.c.l.b16 %v505_v7  ;;  %v321_v18 = vld [vmem:[#allocation2 + $0x8] sm:$0xf] }
  0x8b   :  { %vm2111_vm13 = vcmp.ne.s32.totalorder %v333_v19, %v2007_v35  ;;  %vm338_vm15 = vcmp.ne.s32.totalorder %v334_v21, %v2010_v36  ;;  %vm2116_vm0 = vmpackc.low %vm345_vm12, %vm344_vm8  ;;  %vm518_vm4 = vcmp.ne.s32.totalorder %v514_v30, %v2010_v36  ;;  %vm112_vm8 = vcmp.ne.s32.totalorder %v108_v23, %v2007_v35 }
  0x8c   :  { %v350_v37 = vsel %vm2116_vm0, %v323_v22, 0  ;;  %vm2127_vm1 = vmpackc.low %vm518_vm4, %vm517_vm3  ;;  %vm113_vm12 = vcmp.ne.s32.totalorder %v109_v24, %v2010_v36  ;;  %vm2701_vm4 = vcmask 138240   ;;  %v354_v55 = vsel %vm2116_vm0, %v327_v52, 0 }
  0x8d   :  { %365 = vrot.lane.b32.xlu0 %v350_v37, %s1876_s9  ;;  %v521_v40 = vsel %vm2127_vm1, %v495_v33, 0  ;;  %v523_v41 = vsel %vm2127_vm1, %v497_v34, 0  ;;  %vm2139_vm6 = vmpackc.low %vm338_vm15, %vm2111_vm13  ;;  %v644_v59 = vsel %vm2701_vm4, %v2044_v51, %v2038_v49  ;;  %v525_v6 = vsel %vm2127_vm1, %v499_v63, 0  ;;  %v1774_v32 = vpop.permute.xlu1 %1773  ;;  %v589_v44 = vpop.permute.xlu0 %588 }
  0x8e   :  { %v1787_v43 = vpack.i.bf16 %v523_v41, %v521_v40  ;;  %vm2145_vm3 = vmpackc.low %vm113_vm12, %vm112_vm8  ;;  %v645_v1 = vunpack.c.l.b16 %v644_v59  ;;  %v646_v62 = vunpack.c.h.b16 %v644_v59  ;;  %v527_v49 = vsel %vm2127_vm1, %v501_v0, 0 }
  0x8f   :  { %277 = vrot.lane.b32.xlu2 %v264_v38, %s1880_s17  ;;  %v116_v58 = vsel %vm2145_vm3, %v83_v53, 0  ;;  %v270_v51 = vsel %vm2102_vm7, %v237_v5, 0  ;;  %v1797_v9 = vpack.i.bf16 %v527_v49, %v525_v6  ;;  %v507_v16 = vunpack.c.h.b16 %v505_v7 }
  0x90   :  { %1788 = vrot.lane.b32.xlu1 %v1787_v43, %s1878_s11  ;;  %vm649_vm13 = vcmp.ne.s32.totalorder %v645_v1, %v2007_v35  ;;  %vm650_vm15 = vcmp.ne.s32.totalorder %v646_v62, %v2010_v36  ;;  %vm372_vm1 = vcmask 7168   ;;  %vm510_vm12 = vcmp.ne.s32.totalorder %v506_v11, %v2007_v35  ;;  %v2266_v1 = vld [vmem:[#allocation2 + $0x30] sm:$0xff] }
  0x91   :  { %vm2179_vm8 = vmpackc.low %vm650_vm15, %vm649_vm13  ;;  %vm511_vm4 = vcmp.ne.s32.totalorder %v507_v16, %v2010_v36  ;;  %v423_v8 = vsel %vm372_vm1, %v2041_v50, %v2036_v48  ;;  %v348_v19 = vsel %vm2116_vm0, %v321_v18, 0  ;;  %v233_v48 = vld [vmem:[#allocation2 + $0x18] sm:$0xf]  ;;  %v352_v26 = vsel %vm2116_vm0, %v325_v47, 0 }
  0x92   :  { %v659_v17 = vsel %vm2179_vm8, %v1952_v13, 0  ;;  %v661_v2 = vsel %vm2179_vm8, %v1950_v12, 0  ;;  %vm2199_vm13 = vmpackc.low %vm511_vm4, %vm510_vm12  ;;  %v424_v22 = vunpack.c.l.b16 %v423_v8  ;;  %v425_v23 = vunpack.c.h.b16 %v423_v8 }
  0x93   :  { %v520_v24 = vsel %vm2199_vm13, %v1952_v13, 0  ;;  %v522_v50 = vsel %vm2199_vm13, %v1950_v12, 0  ;;  %vm2216_vm4 = vmpackc.low %vm2032_vm11, %vm2027_vm10  ;;  %v266_v27 = vsel %vm2102_vm7, %v233_v48, 0  ;;  %v524_v33 = vsel %vm2199_vm13, %v1983_v20, 0 }
  0x94   :  { %vm428_vm15 = vcmp.ne.s32.totalorder %v424_v22, %v2007_v35  ;;  %vm429_vm14 = vcmp.ne.s32.totalorder %v425_v23, %v2010_v36  ;;  %v593_v36 = vpop.permute.xlu2 %592  ;;  %v118_v34 = vsel %vm2145_vm3, %v85_v31, 0  ;;  %v1776_v38 = vunpack.i.h.bf16 %v1774_v32 }
  0x95   :  { %390 = vrot.lane.b32.xlu0 %v354_v55, %s1876_s9  ;;  %vm2224_vm12 = vmpackc.low %vm429_vm14, %vm428_vm15  ;;  %v598_v37 = vrot.slane %v593_v36, 4  ;;  %v1775_v39 = vunpack.i.l.bf16 %v1774_v32  ;;  %vm139_vm10 = vcmask 1043456   ;;  %v347_v40 = vsel %vm2139_vm6, %v1995_v28, 0  ;;  %v614_v6 = vpop.permute.xlu0 %613 }
  0x96   :  { %v438_v46 = vsel %vm2224_vm12, %v1952_v13, 0  ;;  %v440_v30 = vsel %vm2224_vm12, %v1950_v12, 0  ;;  %v526_v12 = vsel %vm2199_vm13, %v1955_v14, 0  ;;  %v599_v41 = vrot.slane %v1776_v38, 4  ;;  %v638_v38 = vld [vmem:[#allocation2 + $0x2c] sm:$0xf] }
  0x97   :  { %129 = vrot.lane.b32.xlu2 %v116_v58, %s1877_s10  ;;  %v597_v43 = vrot.slane %v1775_v39, 4  ;;  %vm601_vm11 = vcmask 916480   ;;  %v596_v45 = vrot.slane %v589_v44, 4  ;;  %v349_v52 = vsel %vm2139_vm6, %v1999_v29, 0  ;;  %v640_v39 = vld [vmem:[#allocation2 + $0x3c] sm:$0xf] }
  0x98   :  { %1793 = vrot.lane.b32.xlu1 %v1792_v60, %s1879_s16  ;;  %v603_v55 = vsel %vm139_vm10, %v598_v37, %v599_v41  ;;  %v442_v58 = vsel %vm2224_vm12, %v1983_v20, 0  ;;  %v1779_v60 = vpop.permute.xlu1 %1778  ;;  %v444_v62 = vsel %vm2224_vm12, %v1955_v14, 0  ;;  %v621_v49 = vrot.slane %v614_v6, 4 }
  0x99   :  { %v600_v56 = vsel %vm139_vm10, %v596_v45, %v597_v43  ;;  %v604_v57 = vsel %vm601_vm11, %v593_v36, %v603_v55  ;;  %v1781_v63 = vunpack.i.h.bf16 %v1779_v60  ;;  %v1780_v0 = vunpack.i.l.bf16 %v1779_v60  ;;  %v234_v36 = vld [vmem:[#allocation2 + $0x20] sm:$0xff]  ;;  %v87_v43 = vld [vmem:[#allocation2 + $0x28] sm:$0xf] }
  0x9a   :  { %v602_v59 = vsel %vm601_vm11, %v589_v44, %v600_v56  ;;  %608 = vst [vmem:[#allocation3 + $0xf0] sm:$0xff] %v604_v57  ;;  %v263_v16 = vsel %vm2090_vm5, %v1995_v28, 0  ;;  %v265_v48 = vsel %vm2090_vm5, %v1999_v29, 0  ;;  %vm198_vm7 = vcmask 130048   ;;  %v178_v44 = vld [vmem:[#allocation2 + $0x28] sm:$0xf] }
  0x9b   :  { %607 = vst [vmem:[#allocation3 + $0xe0] sm:$0xff] %v602_v59  ;;  %v622_v5 = vrot.slane %v1780_v0, 4  ;;  %v665_v32 = vsel %vm2179_vm8, %v1955_v14, 0  ;;  %v117_v42 = vsel %vm2216_vm4, %v1999_v29, 0  ;;  %v666_v14 = vsel %vm2064_vm2, %v640_v39, 0 }
  0x9c   :  { %v618_v13 = vpop.permute.xlu2 %617  ;;  %v663_v29 = vsel %vm2179_vm8, %v1983_v20, 0  ;;  %v120_v3 = vsel %vm2145_vm3, %v87_v43, 0  ;;  %v89_v56 = vld [vmem:[#allocation2 + $0x38] sm:$0xf]  ;;  %vm2751_vm8 = vcmask 121856  }
  0x9d   :  { %302 = vrot.lane.b32.xlu0 %v268_v4, %s1880_s17  ;;  %v623_v61 = vrot.slane %v618_v13, 4  ;;  %v624_v4 = vrot.slane %v1781_v63, 4  ;;  %v625_v11 = vsel %vm139_vm10, %v621_v49, %v622_v5  ;;  %v122_v59 = vsel %vm2145_vm3, %v89_v56, 0 }
  0x9e   :  { %v626_v18 = vsel %vm601_vm11, %v614_v6, %v625_v11 }
  0x9f   :  { %306 = vrot.lane.b32.xlu2 %v270_v51, %s1880_s17  ;;  %v353_v51 = vsel %vm2139_vm6, %v2266_v1, 0  ;;  %v627_v7 = vsel %vm139_vm10, %v623_v61, %v624_v4  ;;  %631 = vst [vmem:[#allocation3 + $0xe8] sm:$0xff] %v626_v18  ;;  %v121_v4 = vsel %vm2216_vm4, %v2266_v1, 0 }
  0xa0   :  { %1798 = vrot.lane.b32.xlu1 %v1797_v9, %s1878_s11  ;;  %v628_v9 = vsel %vm601_vm11, %v618_v13, %v627_v7  ;;  %v190_v22 = vpop.permute.xlu1 %189  ;;  %vm2756_vm11 = vcmask 138240  }
  0xa1   :  { %632 = vst [vmem:[#allocation3 + $0xf8] sm:$0xff] %v628_v9 }
  0xa2   :  { %v1665_v8 = vld [vmem:[#allocation3 + $0xe0] sm:$0xf]  ;;  %v1743_v21 = vld [vmem:[#allocation3 + $0xe4] sm:$0xf] }
  0xa4   :  { %v186_v53 = vpop.permute.xlu2 %185 }
  0xa5   :  { %671 = vrot.lane.b32.xlu0 %v659_v17, %s1881_s0  ;;  %v193_v35 = vrot.slane %v186_v53, 4 }
  0xa7   :  { %675 = vrot.lane.b32.xlu2 %v661_v2, %s1881_s0 }
  0xa8   :  { %361 = vrot.lane.b32.xlu1 %v348_v19, %s1876_s9  ;;  %v1745_v19 = vld [vmem:[#allocation3 + $0xec] sm:$0xf0] }
  0xa9   :  { %v1666_v23 = vor.u32 %v1745_v19, %v1665_v8 }
  0xab   :  { %960 = vmatpush.bf16.msra.mxu0 %v1666_v23 }
  0xac   :  { %v192_v17 = vpop.permute.xlu2 %191 }
  0xad   :  { %532 = vrot.lane.b32.xlu0 %v520_v24, %s1878_s11  ;;  %v196_v2 = vrot.slane %v192_v17, 4  ;;  %v1667_v24 = vld [vmem:[#allocation3 + $0xf0] sm:$0xf0] }
  0xaf   :  { %536 = vrot.lane.b32.xlu2 %v522_v50, %s1878_s11  ;;  %v195_v50 = vrot.slane %v190_v22, 4 }
  0xb0   :  { %281 = vrot.lane.b32.xlu1 %v266_v27, %s1880_s17  ;;  %v1670_v27 = vor.u32 %v1743_v21, %v1667_v24 }
  0xb1   :  { %v200_v47 = vsel %vm139_vm10, %v195_v50, %v196_v2 }
  0xb2   :  { %998 = vmatpush.bf16.msra.mxu2 %v1670_v27 }
  0xb5   :  { %450 = vrot.lane.b32.xlu0 %v438_v46, %s1879_s16  ;;  %v267_v46 = vsel %vm2090_vm5, %v234_v36, 0 }
  0xb7   :  { %454 = vrot.lane.b32.xlu2 %v440_v30, %s1879_s16  ;;  %v188_v30 = vpop.permute.xlu0 %187 }
  0xb8   :  { %386 = vrot.lane.b32.xlu1 %v352_v26, %s1876_s9  ;;  %v201_v26 = vsel %vm198_vm7, %v190_v22, %v200_v47  ;;  %v194_v31 = vrot.slane %v188_v30, 4 }
  0xb9   :  { %205 = vst [vmem:[#allocation3 + $0x30] sm:$0xff] %v201_v26 }
  0xba   :  { %v197_v13 = vsel %vm139_vm10, %v193_v35, %v194_v31 }
  0xbd   :  { %556 = vrot.lane.b32.xlu0 %v524_v33, %s1878_s11  ;;  %v115_v33 = vsel %vm2216_vm4, %v1995_v28, 0  ;;  %v269_v28 = vsel %vm2090_vm5, %v2266_v1, 0 }
  0xbf   :  { %560 = vrot.lane.b32.xlu2 %v526_v12, %s1878_s11  ;;  %v351_v12 = vsel %vm2139_vm6, %v234_v36, 0  ;;  %vm2745_vm6 = vcmask 924672  }
  0xc0   :  { %133 = vrot.lane.b32.xlu1 %v118_v34, %s1877_s10  ;;  %v199_v34 = vsel %vm198_vm7, %v186_v53, %v197_v13  ;;  %vm2747_vm5 = vmmov %vm2745_vm6 }
  0xc1   :  { %204 = vst [vmem:[#allocation3 + $0x20] sm:$0xff] %v199_v34  ;;  %vm2748_vm0 = vmmov %vm2747_vm5 }
  0xc2   :  { %vm2750_vm14 = vmmov %vm2748_vm0 }
  0xc5   :  { %359 = vrot.lane.b32.xlu0 %v347_v40, %s1876_s9  ;;  %v664_v40 = vsel %vm2064_vm2, %v638_v38, 0  ;;  %vm2746_vm2 = vcmask 1039360  }
  0xc6   :  { %v1807_v15 = vpack.i.bf16 %v666_v14, %v664_v40  ;;  %v1746_v40 = vld [vmem:[#allocation3 + $0xf4] sm:$0xf0]  ;;  %vm2749_vm3 = vmmov %vm2746_vm2 }
  0xc7   :  { %363 = vrot.lane.b32.xlu2 %v349_v52, %s1876_s9  ;;  %v119_v52 = vsel %vm2216_vm4, %v234_v36, 0  ;;  %vm2752_vm13 = vmmov %vm2746_vm2 }
  0xc8   :  { %474 = vrot.lane.b32.xlu1 %v442_v58, %s1879_s16  ;;  %vm2753_vm15 = vmmov %vm2746_vm2 }
  0xc9   :  { %vm2754_vm4 = vmmov %vm2751_vm8 }
  0xca   :  { %vm2755_vm12 = vmmov %vm2754_vm4 }
  0xcd   :  { %478 = vrot.lane.b32.xlu0 %v444_v62, %s1879_s16 }
  0xcf   :  { %388 = vrot.lane.b32.xlu2 %v353_v51, %s1876_s9 }
  0xd0   :  { %275 = vrot.lane.b32.xlu1 %v263_v16, %s1880_s17 }
  0xd5   :  { %279 = vrot.lane.b32.xlu0 %v265_v48, %s1880_s17 }
  0xd7   :  { %300 = vrot.lane.b32.xlu2 %v267_v46, %s1880_s17 }
  0xd8   :  { %127 = vrot.lane.b32.xlu1 %v115_v33, %s1877_s10 }
  0xdd   :  { %384 = vrot.lane.b32.xlu0 %v351_v12, %s1876_s9 }
  0xdf   :  { %699 = vrot.lane.b32.xlu2 %v665_v32, %s1881_s0  ;;  %v1673_v32 = vld [vmem:[#allocation3 + $0xe8] sm:$0xf] }
  0xe0   :  { %304 = vrot.lane.b32.xlu1 %v269_v28, %s1880_s17  ;;  %v1674_v56 = vor.u32 %v1746_v40, %v1673_v32  ;;  %s1523_s17 = sshll.u32 %s2698_s6, 4  ;;  %s1524_s17 = int_to_ptr.hbm [resolvable:$true] %s1523_s17 }
  0xe1   :  { %v2310_v37 = vpop.permute.xlu2 %1803 }
  0xe2   :  { %v1805_v32 = vunpack.i.l.bf16 %v2310_v37 }
  0xe5   :  { %131 = vrot.lane.b32.xlu0 %v117_v42, %s1877_s10 }
  0xe7   :  { %214 = vrot.lane.b32.xlu2 %v2266_v1, %s1883_s19 }
  0xe8   :  { %1808 = vrot.lane.b32.xlu1 %v1807_v15, %s1881_s0 }
  0xe9   :  { %v2323_v41 = vpop.permute.xlu2 %277 }
  0xed   :  { %695 = vrot.lane.b32.xlu0 %v663_v29, %s1881_s0  ;;  %s1885_s0 = smov [#allocation4]  }
  0xee   :  { %s1521_s18 = sshll.u32 %s1885_s0, 4  ;;  %s1522_s18 = int_to_ptr.vmem [resolvable:$true] %s1521_s18 }
  0xef   :  { %155 = vrot.lane.b32.xlu2 %v120_v3, %s1877_s10 }
  0xf0   :  { %212 = vrot.lane.b32.xlu1 %v178_v44, %s1883_s19 }
  0xf1   :  { %v2333_v45 = vpop.permute.xlu2 %129 }
  0xf5   :  { %210 = vrot.lane.b32.xlu0 %v234_v36, %s1883_s19 }
  0xf8   :  { %153 = vrot.lane.b32.xlu1 %v119_v52, %s1877_s10 }
  0xf9   :  { %v2339_v20 = vpop.permute.xlu2 %306 }
  0xfa   :  { %v1784_v53 = vpop.permute.xlu1 %1783 }
  0xfb   :  { %v1786_v55 = vunpack.i.h.bf16 %v1784_v53  ;;  %v1785_v8 = vunpack.i.l.bf16 %v1784_v53 }
  0xfd   :  { %216 = vrot.lane.b32.xlu0 %v180_v10, %s1883_s19  ;;  %v682_v58 = vrot.slane %v1786_v55, 4  ;;  %v680_v24 = vrot.slane %v1785_v8, 4 }
  0xff   :  { %v2342_v57 = vpop.permute.xlu0 %365 }
 0x100   :  { %159 = vrot.lane.b32.xlu1 %v122_v59, %s1877_s10  ;;  %v370_v28 = vrot.slane %v2342_v57, 4 }
 0x101   :  { %v676_v60 = vpop.permute.xlu2 %675 }
 0x102   :  { %v681_v61 = vrot.slane %v676_v60, 4  ;;  %v1789_v63 = vpop.permute.xlu1 %1788 }
 0x103   :  { %v1791_v0 = vunpack.i.h.bf16 %v1789_v63  ;;  %v1790_v30 = vunpack.i.l.bf16 %v1789_v63 }
 0x104   :  { %v685_v62 = vsel %vm139_vm10, %v681_v61, %v682_v58 }
 0x105   :  { %v686_v5 = vsel %vm99_vm9, %v676_v60, %v685_v62  ;;  %157 = vrot.lane.b32.xlu0 %v121_v4, %s1877_s10  ;;  %v543_v54 = vrot.slane %v1791_v0, 4  ;;  %v541_v13 = vrot.slane %v1790_v30, 4  ;;  %v1619_v30 = vld [vmem:[#allocation3 + $0x90] sm:$0xf0] }
 0x106   :  { %690 = vst [vmem:[#allocation3 + $0x110] sm:$0xff] %v686_v5 }
 0x107   :  { %v2353_v6 = vpop.permute.xlu0 %390 }
 0x108   :  { %v395_v61 = vrot.slane %v2353_v6, 4 }
 0x109   :  { %v537_v49 = vpop.permute.xlu2 %536 }
 0x10a   :  { %v542_v51 = vrot.slane %v537_v49, 4  ;;  %v1794_v7 = vpop.permute.xlu1 %1793 }
 0x10b   :  { %v1796_v16 = vunpack.i.h.bf16 %v1794_v7  ;;  %v1795_v44 = vunpack.i.l.bf16 %v1794_v7 }
 0x10c   :  { %v546_v9 = vsel %vm139_vm10, %v542_v51, %v543_v54 }
 0x10d   :  { %v547_v11 = vsel %vm2745_vm6, %v537_v49, %v546_v9  ;;  %v461_v1 = vrot.slane %v1796_v16, 4  ;;  %v1749_v42 = vld [vmem:[#allocation3 + $0x10c] sm:$0xf0]  ;;  %v1683_v3 = vld [vmem:[#allocation3 + $0x110] sm:$0xf0]  ;;  %v459_v58 = vrot.slane %v1795_v44, 4  ;;  %v1806_v44 = vunpack.i.h.bf16 %v2310_v37  ;;  %vm2758_vm6 = vmmov %vm2756_vm11 }
 0x10e   :  { %551 = vst [vmem:[#allocation3 + $0xd0] sm:$0xff] %v547_v11 }
 0x10f   :  { %v2357_v17 = vpop.permute.xlu0 %302 }
 0x111   :  { %v455_v25 = vpop.permute.xlu2 %454 }
 0x112   :  { %v460_v18 = vrot.slane %v455_v25, 4  ;;  %v2359_v2 = vpop.permute.xlu1 %1798 }
 0x113   :  { %v1801_v22 = vunpack.i.h.bf16 %v2359_v2  ;;  %v1800_v7 = vunpack.i.l.bf16 %v2359_v2 }
 0x114   :  { %v464_v19 = vsel %vm139_vm10, %v460_v18, %v461_v1 }
 0x115   :  { %v465_v21 = vsel %vm2746_vm2, %v455_v25, %v464_v19  ;;  %v567_v27 = vrot.slane %v1801_v22, 4  ;;  %v1741_v62 = vld [vmem:[#allocation3 + $0xcc] sm:$0xf0]  ;;  %v1651_v51 = vld [vmem:[#allocation3 + $0xd0] sm:$0xf0]  ;;  %v565_v1 = vrot.slane %v1800_v7, 4  ;;  %vm2760_vm2 = vmmov %vm2758_vm6 }
 0x116   :  { %469 = vst [vmem:[#allocation3 + $0xb0] sm:$0xff] %v465_v21  ;;  %v1617_v22 = vld [vmem:[#allocation3 + $0x80] sm:$0xf]  ;;  %v1711_v7 = vld [vmem:[%s2693_s1 + $0x4] sm:$0xf] }
 0x117   :  { %v672_v23 = vpop.permute.xlu0 %671 }
 0x118   :  { %v679_v48 = vrot.slane %v672_v23, 4 }
 0x119   :  { %v561_v50 = vpop.permute.xlu2 %560 }
 0x11a   :  { %v683_v35 = vsel %vm139_vm10, %v679_v48, %v680_v24  ;;  %v566_v36 = vrot.slane %v561_v50, 4  ;;  %v2366_v47 = vpop.permute.xlu1 %361  ;;  %v1733_v48 = vld [vmem:[#allocation3 + $0x8c] sm:$0xf0] }
 0x11b   :  { %v684_v46 = vsel %vm99_vm9, %v672_v23, %v683_v35  ;;  %v309_v23 = vrot.slane %v2357_v17, 4  ;;  %v1618_v17 = vor.u32 %v1733_v48, %v1617_v22 }
 0x11c   :  { %689 = vst [vmem:[#allocation3 + $0x100] sm:$0xff] %v684_v46  ;;  %v570_v26 = vsel %vm139_vm10, %v566_v36, %v567_v27 }
 0x11d   :  { %v571_v31 = vsel %vm2747_vm5, %v561_v50, %v570_v26  ;;  %v1737_v19 = vld [vmem:[#allocation3 + $0xac] sm:$0xf0]  ;;  %v1635_v21 = vld [vmem:[#allocation3 + $0xb0] sm:$0xf0]  ;;  %v1731_v50 = vld [vmem:[#allocation3 + $0x84] sm:$0xf] }
 0x11e   :  { %575 = vst [vmem:[#allocation3 + $0xd8] sm:$0xff] %v571_v31 }
 0x11f   :  { %v533_v33 = vpop.permute.xlu0 %532 }
 0x120   :  { %v540_v34 = vrot.slane %v533_v33, 4 }
 0x121   :  { %v364_v12 = vpop.permute.xlu2 %363 }
 0x122   :  { %v544_v38 = vsel %vm139_vm10, %v540_v34, %v541_v13  ;;  %v369_v39 = vrot.slane %v364_v12, 4  ;;  %v2373_v15 = vpop.permute.xlu1 %281  ;;  %v1622_v34 = vor.u32 %v1731_v50, %v1619_v30 }
 0x123   :  { %v545_v14 = vsel %vm2748_vm0, %v533_v33, %v544_v38  ;;  %v1681_v43 = vld [vmem:[#allocation3 + $0x100] sm:$0xf]  ;;  %v1747_v29 = vld [vmem:[#allocation3 + $0x104] sm:$0xf] }
 0x124   :  { %550 = vst [vmem:[#allocation3 + $0xc0] sm:$0xff] %v545_v14  ;;  %v374_v52 = vsel %vm139_vm10, %v369_v39, %v370_v28  ;;  %v1682_v10 = vor.u32 %v1749_v42, %v1681_v43  ;;  %v1686_v53 = vor.u32 %v1747_v29, %v1683_v3  ;;  %v368_v28 = vrot.slane %v2366_v47, 4  ;;  %v406_v29 = vld [vmem:[#allocation2 + $0x24] sm:$0xff]  ;;  %v407_v3 = vld [vmem:[#allocation2 + $0x34] sm:$0xff] }
 0x125   :  { %v375_v55 = vsel %vm372_vm1, %v364_v12, %v374_v52  ;;  %v1742_v42 = vld [vmem:[#allocation3 + $0xd4] sm:$0xf0]  ;;  %v483_v52 = vrot.slane %v1805_v32, 4  ;;  %410 = vst [vmem:[#allocation3 + $0x88] sm:$0xff] %v406_v29  ;;  %v1571_v29 = vld [vmem:[#allocation3 + $0x30] sm:$0xf0] }
 0x126   :  { %379 = vst [vmem:[#allocation3 + $0x70] sm:$0xff] %v375_v55  ;;  %986 = vmatpush.bf16.msra.mxu1 %v1682_v10  ;;  %1024 = vmatpush.bf16.msra.mxu3 %v1686_v53 }
 0x127   :  { %v451_v57 = vpop.permute.xlu0 %450  ;;  %411 = vst [vmem:[#allocation3 + $0x98] sm:$0xff] %v407_v3 }
 0x128   :  { %v458_v59 = vrot.slane %v451_v57, 4 }
 0x129   :  { %v389_v60 = vpop.permute.xlu2 %388 }
 0x12a   :  { %1036 = vmatpush.bf16.msrb.mxu1 %v1674_v56  ;;  %v462_v63 = vsel %vm139_vm10, %v458_v59, %v459_v58  ;;  %v394_v0 = vrot.slane %v389_v60, 4  ;;  %v2380_v5 = vpop.permute.xlu1 %386 }
 0x12b   :  { %v463_v4 = vsel %vm2749_vm3, %v451_v57, %v462_v63  ;;  %v1649_v54 = vld [vmem:[#allocation3 + $0xc0] sm:$0xf]  ;;  %v1739_v49 = vld [vmem:[#allocation3 + $0xc4] sm:$0xf]  ;;  %v485_v57 = vrot.slane %v1806_v44, 4  ;;  %v393_v30 = vrot.slane %v2380_v5, 4 }
 0x12c   :  { %468 = vst [vmem:[#allocation3 + $0xa0] sm:$0xff] %v463_v4  ;;  %v398_v9 = vsel %vm139_vm10, %v394_v0, %v395_v61  ;;  %v1650_v11 = vor.u32 %v1741_v62, %v1649_v54  ;;  %v1654_v16 = vor.u32 %v1739_v49, %v1651_v51  ;;  %v284_v4 = vrot.slane %v2323_v41, 4 }
 0x12d   :  { %v399_v6 = vsel %vm372_vm1, %v389_v60, %v398_v9  ;;  %v1729_v60 = vld [vmem:[#allocation3 + $0x6c] sm:$0xf0]  ;;  %v1603_v62 = vld [vmem:[#allocation3 + $0x70] sm:$0xf0]  ;;  %v1539_v9 = vld [vmem:[%s2693_s1 + $0x8] sm:$0xf0] }
 0x12e   :  { %403 = vst [vmem:[#allocation3 + $0x78] sm:$0xff] %v399_v6  ;;  %961 = vmatpush.bf16.msra.mxu0 %v1650_v11  ;;  %999 = vmatpush.bf16.msra.mxu2 %v1654_v16  ;;  %v2409_v16 = vor.u32 %v1711_v7, %v1539_v9  ;;  %v1113_v9 = vld [vmem:[%s2694_s2 + $0x8] sm:$0xff] }
 0x12f   :  { %v557_v25 = vpop.permute.xlu0 %556  ;;  %1123 = vperm.xlu0 %1813, %v1113_v9  }
 0x130   :  { %v564_v18 = vrot.slane %v557_v25, 4  ;;  %1697 = vmatmul.msk.bf16.vlgmr.msra.gmra.mxu3 %vm198_vm7, %v2409_v16  ;;  %1695 = vmatmul.msk.bf16.vlgmr.msra.gmra.mxu1 %vm198_vm7, %v2409_v16 }
 0x131   :  { %v301_v8 = vpop.permute.xlu2 %300 }
 0x132   :  { %v568_v2 = vsel %vm139_vm10, %v564_v18, %v565_v1  ;;  %v308_v24 = vrot.slane %v301_v8, 4  ;;  %v2388_v35 = vpop.permute.xlu1 %133 }
 0x133   :  { %v569_v27 = vsel %vm2750_vm14, %v557_v25, %v568_v2  ;;  %v1633_v36 = vld [vmem:[#allocation3 + $0xa0] sm:$0xf]  ;;  %v1735_v46 = vld [vmem:[#allocation3 + $0xa4] sm:$0xf]  ;;  %v286_v25 = vrot.slane %v2373_v15, 4 }
 0x134   :  { %574 = vst [vmem:[#allocation3 + $0xc8] sm:$0xff] %v569_v27  ;;  %v312_v26 = vsel %vm139_vm10, %v308_v24, %v309_v23  ;;  %v1634_v31 = vor.u32 %v1737_v19, %v1633_v36  ;;  %v1638_v33 = vor.u32 %v1735_v46, %v1635_v21  ;;  %v1734_v2 = vld [vmem:[#allocation3 + $0x94] sm:$0xf0]  ;;  %v136_v24 = vrot.slane %v2333_v45, 4 }
 0x135   :  { %v313_v13 = vsel %vm2751_vm8, %v301_v8, %v312_v26  ;;  %v1625_v8 = vld [vmem:[#allocation3 + $0x88] sm:$0xf] }
 0x136   :  { %318 = vst [vmem:[#allocation3 + $0x48] sm:$0xff] %v313_v13  ;;  %962 = vmatpush.bf16.msra.mxu0 %v1634_v31  ;;  %1000 = vmatpush.bf16.msra.mxu2 %v1638_v33  ;;  %v1626_v27 = vor.u32 %v1734_v2, %v1625_v8  ;;  %v311_v31 = vrot.slane %v2339_v20, 4  ;;  %v1713_v20 = vld [vmem:[%s2693_s1 + $0x14] sm:$0xf]  ;;  %v1675_v8 = vld [vmem:[#allocation3 + $0xf8] sm:$0xf0] }
 0x137   :  { %v360_v12 = vpop.permute.xlu0 %359  ;;  %v1153_v2 = vld [vmem:[%s2695_s3 + $0x8] sm:$0xff] }
 0x138   :  { %v367_v38 = vrot.slane %v360_v12, 4 }
 0x13a   :  { %v371_v39 = vsel %vm139_vm10, %v367_v38, %v368_v28  ;;  %963 = vmatpush.bf16.msra.mxu0 %v1618_v17  ;;  %1001 = vmatpush.bf16.msra.mxu2 %v1622_v34  ;;  %v475_v14 = vpop.permute.xlu1 %474  ;;  %v1569_v28 = vld [vmem:[#allocation3 + $0x20] sm:$0xf]  ;;  %v700_v38 = vpop.permute.xlu2 %699 }
 0x13b   :  { %v373_v40 = vsel %vm372_vm1, %v360_v12, %v371_v39  ;;  %v1657_v43 = vld [vmem:[#allocation3 + $0xc8] sm:$0xf]  ;;  %v482_v10 = vrot.slane %v475_v14, 4 }
 0x13c   :  { %378 = vst [vmem:[#allocation3 + $0x60] sm:$0xff] %v373_v40  ;;  %v1658_v53 = vor.u32 %v1742_v42, %v1657_v43  ;;  %v1547_v40 = vld [vmem:[%s2693_s1 + $0x18] sm:$0xf0]  ;;  %v1719_v43 = vld [vmem:[#allocation3 + $0x24] sm:$0xf] }
 0x13d   :  { %v486_v47 = vsel %vm139_vm10, %v482_v10, %v483_v52  ;;  %v2432_v3 = vor.u32 %v1713_v20, %v1547_v40 }
 0x13e   :  { %1037 = vmatpush.bf16.msrb.mxu1 %v1658_v53  ;;  %v487_v55 = vsel %vm2752_vm13, %v475_v14, %v486_v47  ;;  %v1721_v14 = vld [vmem:[#allocation3 + $0x2c] sm:$0xf0]  ;;  %v138_v53 = vrot.slane %v2388_v35, 4 }
 0x13f   :  { %v479_v56 = vpop.permute.xlu0 %478  ;;  %492 = vst [vmem:[#allocation3 + $0xa8] sm:$0xff] %v487_v55  ;;  %v1570_v55 = vor.u32 %v1721_v14, %v1569_v28 }
 0x140   :  { %v484_v58 = vrot.slane %v479_v56, 4  ;;  %1698 = vmatmul.msk.bf16.gmra.mxu3 %vm198_vm7, %v2432_v3  ;;  %1696 = vmatmul.msk.bf16.gmra.mxu1 %vm198_vm7, %v2432_v3 }
 0x142   :  { %v488_v59 = vsel %vm139_vm10, %v484_v58, %v485_v57  ;;  %v276_v61 = vpop.permute.xlu1 %275 }
 0x143   :  { %v489_v37 = vsel %vm2753_vm15, %v479_v56, %v488_v59  ;;  %v1601_v63 = vld [vmem:[#allocation3 + $0x60] sm:$0xf]  ;;  %v1727_v0 = vld [vmem:[#allocation3 + $0x64] sm:$0xf]  ;;  %v283_v54 = vrot.slane %v276_v61, 4  ;;  %v1574_v56 = vor.u32 %v1719_v43, %v1571_v29  ;;  %v1154_v29 = vld [vmem:[%s2695_s3 + $0x10] sm:$0xff] }
 0x144   :  { %493 = vst [vmem:[#allocation3 + $0xb8] sm:$0xff] %v489_v37  ;;  %v1602_v49 = vor.u32 %v1729_v60, %v1601_v63  ;;  %v1606_v51 = vor.u32 %v1727_v0, %v1603_v62  ;;  %v1730_v37 = vld [vmem:[#allocation3 + $0x74] sm:$0xf0]  ;;  %v1114_v0 = vld [vmem:[%s2694_s2 + $0x10] sm:$0xff]  ;;  %v705_v62 = vrot.slane %v700_v38, 4  ;;  %1168 = vperm.xlu0 %1813, %v1154_v29  }
 0x145   :  { %v287_v11 = vsel %vm139_vm10, %v283_v54, %v284_v4  ;;  %1128 = vperm.xlu1 %1814, %v1114_v0   ;;  %v2446_v4 = vpop.permute.xlu2 %214 }
 0x146   :  { %964 = vmatpush.bf16.msra.mxu0 %v1602_v49  ;;  %1002 = vmatpush.bf16.msra.mxu2 %v1606_v51  ;;  %v289_v41 = vsel %vm2754_vm4, %v276_v61, %v287_v11  ;;  %v1641_v22 = vld [vmem:[#allocation3 + $0xa8] sm:$0xf] }
 0x147   :  { %v280_v6 = vpop.permute.xlu0 %279  ;;  %294 = vst [vmem:[#allocation3 + $0x40] sm:$0xff] %v289_v41  ;;  %v1593_v51 = vld [vmem:[#allocation3 + $0x48] sm:$0xf] }
 0x148   :  { %v285_v1 = vrot.slane %v280_v6, 4 }
 0x14a   :  { %v290_v18 = vsel %vm139_vm10, %v285_v1, %v286_v25  ;;  %v128_v21 = vpop.permute.xlu1 %127 }
 0x14b   :  { %v291_v19 = vsel %vm2755_vm12, %v280_v6, %v290_v18  ;;  %v1738_v23 = vld [vmem:[#allocation3 + $0xb4] sm:$0xf0]  ;;  %v135_v15 = vrot.slane %v128_v21, 4  ;;  %v1744_v18 = vld [vmem:[#allocation3 + $0xec] sm:$0xf] }
 0x14c   :  { %295 = vst [vmem:[#allocation3 + $0x50] sm:$0xff] %v291_v19  ;;  %v1642_v48 = vor.u32 %v1738_v23, %v1641_v22  ;;  %v1537_v19 = vld [vmem:[%s2693_s1] sm:$0xf]  ;;  %v1712_v23 = vld [vmem:[%s2693_s1 + $0x4] sm:$0xf0] }
 0x14d   :  { %v140_v50 = vsel %vm139_vm10, %v135_v15, %v136_v24  ;;  %1163 = vperm.xlu1 %1814, %v1153_v2  }
 0x14e   :  { %1038 = vmatpush.bf16.msrb.mxu1 %v1642_v48  ;;  %v142_v36 = vsel %vm2756_vm11, %v128_v21, %v140_v50  ;;  %v1585_v13 = vld [vmem:[#allocation3 + $0x40] sm:$0xf]  ;;  %v1723_v12 = vld [vmem:[#allocation3 + $0x44] sm:$0xf] }
 0x14f   :  { %v385_v46 = vpop.permute.xlu0 %384  ;;  %147 = vst [vmem:[#allocation3] sm:$0xff] %v142_v36 }
 0x150   :  { %v392_v26 = vrot.slane %v385_v46, 4 }
 0x152   :  { %v396_v33 = vsel %vm139_vm10, %v392_v26, %v393_v30  ;;  %1039 = vmatpush.bf16.msrb.mxu1 %v1626_v27  ;;  %v305_v17 = vpop.permute.xlu1 %304  ;;  %v2464_v30 = vor.u32 %v1744_v18, %v1675_v8  ;;  %v2466_v26 = vor.u32 %v1712_v23, %v1537_v19  ;;  %v1724_v18 = vld [vmem:[#allocation3 + $0x4c] sm:$0xf]  ;;  %v1152_v19 = vld [vmem:[%s2695_s3] sm:$0xff] }
 0x153   :  { %v397_v45 = vsel %vm372_vm1, %v385_v46, %v396_v33  ;;  %v1725_v34 = vld [vmem:[#allocation3 + $0x4c] sm:$0xf0]  ;;  %v1587_v32 = vld [vmem:[#allocation3 + $0x50] sm:$0xf0]  ;;  %v310_v39 = vrot.slane %v305_v17, 4  ;;  %vm2757_vm1 = vmmov %vm2754_vm4 }
 0x154   :  { %402 = vst [vmem:[#allocation3 + $0x68] sm:$0xff] %v397_v45  ;;  %v1586_v42 = vor.u32 %v1725_v34, %v1585_v13  ;;  %v1590_v5 = vor.u32 %v1723_v12, %v1587_v32  ;;  %v1740_v33 = vld [vmem:[#allocation3 + $0xcc] sm:$0xf]  ;;  %v156_v45 = vpop.permute.xlu2 %155  ;;  %v1659_v34 = vld [vmem:[#allocation3 + $0xd8] sm:$0xf0] }
 0x155   :  { %v314_v44 = vsel %vm139_vm10, %v310_v39, %v311_v31  ;;  %v2470_v12 = vor.u32 %v1740_v33, %v1659_v34  ;;  %v1736_v39 = vld [vmem:[#allocation3 + $0xac] sm:$0xf] }
 0x156   :  { %965 = vmatpush.bf16.msra.mxu0 %v1586_v42  ;;  %1003 = vmatpush.bf16.msra.mxu2 %v1590_v5  ;;  %v315_v52 = vsel %vm2757_vm1, %v305_v17, %v314_v44  ;;  %v1553_v22 = vld [vmem:[#allocation3] sm:$0xf]  ;;  %v1715_v50 = vld [vmem:[#allocation3 + $0x4] sm:$0xf]  ;;  %v1643_v42 = vld [vmem:[#allocation3 + $0xb8] sm:$0xf0] }
 0x157   :  { %v132_v10 = vpop.permute.xlu0 %131  ;;  %319 = vst [vmem:[#allocation3 + $0x58] sm:$0xff] %v315_v52  ;;  %v162_v5 = vrot.slane %v156_v45, 4 }
 0x158   :  { %v137_v47 = vrot.slane %v132_v10, 4 }
 0x15a   :  { %v143_v57 = vsel %vm139_vm10, %v137_v47, %v138_v53  ;;  %966 = vmatpush.bf16.msra.mxu0 %v1570_v55  ;;  %1004 = vmatpush.bf16.msra.mxu2 %v1574_v56  ;;  %v1809_v59 = vpop.permute.xlu1 %1808  ;;  %v1732_v53 = vld [vmem:[#allocation3 + $0x8c] sm:$0xf]  ;;  %v1627_v47 = vld [vmem:[#allocation3 + $0x98] sm:$0xf0]  ;;  %v2479_v55 = vor.u32 %v1736_v39, %v1643_v42  ;;  %v220_v56 = vrot.slane %v2446_v4, 4 }
 0x15b   :  { %v144_v58 = vsel %vm2758_vm6, %v132_v10, %v143_v57  ;;  %v1609_v60 = vld [vmem:[#allocation3 + $0x68] sm:$0xf]  ;;  %v1811_v35 = vunpack.i.h.bf16 %v1809_v59  ;;  %v1810_v61 = vunpack.i.l.bf16 %v1809_v59  ;;  %v1728_v0 = vld [vmem:[#allocation3 + $0x6c] sm:$0xf] }
 0x15c   :  { %148 = vst [vmem:[#allocation3 + $0x10] sm:$0xff] %v144_v58  ;;  %v1610_v63 = vor.u32 %v1730_v37, %v1609_v60  ;;  %v1630_v60 = vor.u32 %v1732_v53, %v1627_v47  ;;  %v1112_v37 = vld [vmem:[%s2694_s2] sm:$0xff] }
 0x15d   :  { %v706_v54 = vrot.slane %v1811_v35, 4  ;;  %v704_v41 = vrot.slane %v1810_v61, 4  ;;  %v1155_v35 = vld [vmem:[%s2695_s3 + $0x18] sm:$0xff]  ;;  %1118 = vperm.xlu2 %1812, %v1112_v37  }
 0x15e   :  { %1040 = vmatpush.bf16.msrb.mxu1 %v1610_v63  ;;  %v1726_v7 = vld [vmem:[#allocation3 + $0x54] sm:$0xf0]  ;;  %1173 = vperm.xlu1 %1814, %v1155_v35  }
 0x15f   :  { %v696_v49 = vpop.permute.xlu0 %695  ;;  %v709_v11 = vsel %vm139_vm10, %v705_v62, %v706_v54  ;;  %v1594_v25 = vor.u32 %v1726_v7, %v1593_v51  ;;  %v1545_v62 = vld [vmem:[%s2693_s1 + $0x10] sm:$0xf]  ;;  %v1714_v54 = vld [vmem:[%s2693_s1 + $0x14] sm:$0xf0]  ;;  %v1611_v51 = vld [vmem:[#allocation3 + $0x78] sm:$0xf0] }
 0x160   :  { %v703_v6 = vrot.slane %v696_v49, 4  ;;  %v710_v1 = vsel %vm99_vm9, %v700_v38, %v709_v11  ;;  %v1614_v9 = vor.u32 %v1728_v0, %v1611_v51  ;;  %v1546_v11 = vor.u32 %v1714_v54, %v1545_v62 }
 0x161   :  { %714 = vst [vmem:[#allocation3 + $0x118] sm:$0xff] %v710_v1 }
 0x162   :  { %v707_v21 = vsel %vm139_vm10, %v703_v6, %v704_v41  ;;  %1041 = vmatpush.bf16.msrb.mxu1 %v1594_v25  ;;  %v213_v15 = vpop.permute.xlu1 %212  ;;  %v1595_v41 = vld [vmem:[#allocation3 + $0x58] sm:$0xf0] }
 0x163   :  { %v708_v24 = vsel %vm99_vm9, %v696_v49, %v707_v21  ;;  %v1717_v48 = vld [vmem:[#allocation3 + $0xc] sm:$0xf0]  ;;  %v1555_v27 = vld [vmem:[#allocation3 + $0x10] sm:$0xf0]  ;;  %v219_v31 = vrot.slane %v213_v15, 4  ;;  %vm2759_vm9 = vmmov %vm2758_vm6  ;;  %v1598_v8 = vor.u32 %v1724_v18, %v1595_v41 }
 0x164   :  { %713 = vst [vmem:[#allocation3 + $0x108] sm:$0xff] %v708_v24  ;;  %v1554_v36 = vor.u32 %v1717_v48, %v1553_v22  ;;  %v1558_v46 = vor.u32 %v1715_v50, %v1555_v27 }
 0x165   :  { %1158 = vperm.xlu2 %1812, %v1152_v19  }
 0x166   :  { %967 = vmatpush.bf16.msra.mxu0 %v1554_v36  ;;  %1005 = vmatpush.bf16.msra.mxu2 %v1558_v46 }
 0x167   :  { %v211_v13 = vpop.permute.xlu0 %210 }
 0x168   :  { %v218_v17 = vrot.slane %v211_v13, 4  ;;  %v1750_v28 = vld [vmem:[#allocation3 + $0x114] sm:$0xf0]  ;;  %v1691_v38 = vld [vmem:[#allocation3 + $0x118] sm:$0xf0] }
 0x169   :  { %1006 = vmatmul.bf16.vlgmr.msra.gmra.mxu2 %v2466_v26  ;;  %968 = vmatmul.bf16.vlgmr.msra.gmra.mxu0 %v2466_v26 }
 0x16a   :  { %1074 = vmatpush.bf16.msrb.mxu0 %v2464_v30  ;;  %v222_v32 = vsel %vm139_vm10, %v218_v17, %v219_v31  ;;  %v154_v40 = vpop.permute.xlu1 %153  ;;  %v1115_v31 = vld [vmem:[%s2694_s2 + $0x18] sm:$0xff] }
 0x16b   :  { %v223_v20 = vsel %vm198_vm7, %v211_v13, %v222_v32  ;;  %v1689_v14 = vld [vmem:[#allocation3 + $0x108] sm:$0xf]  ;;  %v1748_v43 = vld [vmem:[#allocation3 + $0x10c] sm:$0xf]  ;;  %v161_v44 = vrot.slane %v154_v40, 4 }
 0x16c   :  { %228 = vst [vmem:[#allocation3 + $0x28] sm:$0xff] %v223_v20  ;;  %v1690_v52 = vor.u32 %v1750_v28, %v1689_v14  ;;  %v1694_v10 = vor.u32 %v1748_v43, %v1691_v38 }
 0x16d   :  { %v165_v57 = vsel %vm139_vm10, %v161_v44, %v162_v5  ;;  %1133 = vperm.xlu2 %1812, %v1115_v31  }
 0x16e   :  { %1075 = vmatpush.bf16.msrb.mxu0 %v2470_v12  ;;  %1062 = vmatpush.bf16.msrb.mxu3 %v1690_v52  ;;  %v166_v58 = vsel %vm2759_vm9, %v154_v40, %v165_v57 }
 0x16f   :  { %1100 = vmatpush.bf16.msrb.mxu2 %v1694_v10  ;;  %v217_v59 = vpop.permute.xlu0 %216  ;;  %171 = vst [vmem:[#allocation3 + $0x8] sm:$0xff] %v166_v58 }
 0x170   :  { %v221_v61 = vrot.slane %v217_v59, 4 }
 0x171   :  { %1699 = vmatmul.msk.bf16.vlgmr.msrb.gmra.mxu3 %vm198_vm7, %v2409_v16 }
 0x172   :  { %1076 = vmatpush.bf16.msrb.mxu0 %v2479_v55  ;;  %1759 = vmatpush.bf16.msra.mxu3 %v1694_v10  ;;  %v224_v63 = vsel %vm139_vm10, %v220_v56, %v221_v61  ;;  %v160_v7 = vpop.permute.xlu1 %159 }
 0x173   :  { %v225_v49 = vsel %vm198_vm7, %v2446_v4, %v224_v63  ;;  %v164_v25 = vrot.slane %v160_v7, 4  ;;  %v1577_v21 = vld [vmem:[#allocation3 + $0x28] sm:$0xf]  ;;  %v1720_v2 = vld [vmem:[#allocation3 + $0x2c] sm:$0xf] }
 0x174   :  { %229 = vst [vmem:[#allocation3 + $0x38] sm:$0xff] %v225_v49 }
 0x176   :  { %1077 = vmatpush.bf16.msrb.mxu0 %v1630_v60  ;;  %v1561_v50 = vld [vmem:[#allocation3 + $0x8] sm:$0xf]  ;;  %v1716_v27 = vld [vmem:[#allocation3 + $0xc] sm:$0xf] }
 0x177   :  { %v158_v6 = vpop.permute.xlu0 %157 }
 0x178   :  { %v163_v1 = vrot.slane %v158_v6, 4 }
 0x179   :  { %1011 = vmatmul.bf16.gmra.mxu2 %v1546_v11  ;;  %973 = vmatmul.bf16.gmra.mxu0 %v1546_v11 }
 0x17a   :  { %1078 = vmatpush.bf16.msrb.mxu0 %v1614_v9  ;;  %v167_v4 = vsel %vm139_vm10, %v163_v1, %v164_v25 }
 0x17b   :  { %v168_v22 = vsel %vm2760_vm2, %v158_v6, %v167_v4  ;;  %v1722_v23 = vld [vmem:[#allocation3 + $0x34] sm:$0xf0]  ;;  %v1579_v24 = vld [vmem:[#allocation3 + $0x38] sm:$0xf0] }
 0x17c   :  { %172 = vst [vmem:[#allocation3 + $0x18] sm:$0xff] %v168_v22  ;;  %v1578_v15 = vor.u32 %v1722_v23, %v1577_v21  ;;  %v1582_v48 = vor.u32 %v1720_v2, %v1579_v24 }
 0x17e   :  { %1079 = vmatpush.bf16.msrb.mxu0 %v1598_v8  ;;  %1042 = vmatpush.bf16.msrb.mxu1 %v1578_v15 }
 0x181   :  { %1700 = vmatmul.msk.bf16.gmra.mxu3 %vm198_vm7, %v2432_v3 }
 0x182   :  { %1080 = vmatpush.bf16.msrb.mxu0 %v1582_v48 }
 0x183   :  { %v1718_v36 = vld [vmem:[#allocation3 + $0x14] sm:$0xf0]  ;;  %v1563_v46 = vld [vmem:[#allocation3 + $0x18] sm:$0xf0] }
 0x184   :  { %v1562_v33 = vor.u32 %v1718_v36, %v1561_v50  ;;  %v1566_v13 = vor.u32 %v1716_v27, %v1563_v46 }
 0x186   :  { %1043 = vmatpush.bf16.msrb.mxu1 %v1562_v33  ;;  %1081 = vmatpush.bf16.msrb.mxu0 %v1566_v13 }
 0x189   :  { %1044 = vmatmul.bf16.vlgmr.msrb.gmra.mxu1 %v2466_v26  ;;  %1701 = vmatmul.msk.bf16.vlgmr.msrb.gmra.mxu2 %vm198_vm7, %v2409_v16 }
 0x18a   :  { %1751 = vmatpush.bf16.msra.mxu1 %v2464_v30  ;;  %1082 = vmatmul.bf16.vlgmr.msrb.gmra.mxu0 %v2466_v26 }
 0x18e   :  { %1752 = vmatpush.bf16.msra.mxu1 %v2470_v12 }
 0x191   :  { %1702 = vmatmul.msk.bf16.vlgmr.msra.gmra.mxu3 %vm198_vm7, %v2432_v3  ;;  %vm1223_vm7 = vcmask 15360  }
 0x192   :  { %1753 = vmatpush.bf16.msra.mxu1 %v2479_v55 }
 0x196   :  { %1754 = vmatpush.bf16.msra.mxu1 %v1630_v60 }
 0x199   :  { %1049 = vmatmul.bf16.gmra.mxu1 %v1546_v11 }
 0x19a   :  { %1755 = vmatpush.bf16.msra.mxu1 %v1614_v9 }
 0x19e   :  { %1756 = vmatpush.bf16.msra.mxu1 %v1598_v8 }
 0x1a1   :  { %v1124_v29 = vpop.permute.xlu0 %1123 }
 0x1a2   :  { %1757 = vmatpush.bf16.msra.mxu1 %v1582_v48 }
 0x1a6   :  { %1758 = vmatpush.bf16.msra.mxu1 %v1566_v13 }
 0x1a9   :  { %1087 = vmatmul.bf16.vlgmr.msra.gmra.mxu1 %v1546_v11 }
 0x1ad   :  { %v988_v17 = vpop.f32.mrf.mxu1 }
 0x1b3   :  { %v1026_v30 = vpop.f32.mrf.mxu3 }
 0x1b5   :  { %v990_v12 = vpop.f32.mrf.mxu1 }
 0x1b6   :  { %v1169_v49 = vpop.permute.xlu0 %1168 }
 0x1b7   :  { %v1119_v16 = vpop.permute.xlu2 %1118  ;;  %v2521_v38 = vpop.permute.xlu1 %1128 }
 0x1bb   :  { %v1028_v45 = vpop.f32.mrf.mxu3 }
 0x1bd   :  { %v993_v53 = vpop.f32.mrf.mxu1 }
 0x1bf   :  { %v1159_v5 = vpop.permute.xlu2 %1158  ;;  %v1164_v56 = vpop.permute.xlu1 %1163 }
 0x1c3   :  { %v1031_v26 = vpop.f32.mrf.mxu3 }
 0x1c5   :  { %v995_v54 = vpop.f32.mrf.mxu1 }
 0x1c7   :  { %v1134_v36 = vpop.permute.xlu2 %1133 }
 0x1cb   :  { %v1033_v44 = vpop.f32.mrf.mxu3 }
 0x1e6   :  { %v969_v34 = vpop.f32.mrf.mxu0 }
 0x1e7   :  { %v989_v32 = vadd.f32 %v988_v17, %v969_v34  ;;  %v1174_v34 = vpop.permute.xlu1 %1173 }
 0x1e9   :  { %v1136_v3 = vmul.f32 %v1119_v16, %v989_v32 }
 0x1eb   :  { %v2523_v14 = vadd.f32 %v1159_v5, %v1136_v3 }
 0x1ec   :  { %v1007_v28 = vpop.f32.mrf.mxu2 }
 0x1ed   :  { %v1027_v39 = vadd.f32 %v1026_v30, %v1007_v28 }
 0x1ee   :  { %v971_v42 = vpop.f32.mrf.mxu0 }
 0x1ef   :  { %v1137_v20 = vmul.f32 %v1119_v16, %v1027_v39  ;;  %v991_v40 = vadd.f32 %v990_v12, %v971_v42 }
 0x1f1   :  { %v2525_v43 = vadd.f32 %v1159_v5, %v1137_v20  ;;  %v1140_v55 = vmul.f32 %v1124_v29, %v991_v40 }
 0x1f3   :  { %v1192_v52 = vadd.f32 %v2525_v43, %v2523_v14  ;;  %v2529_v60 = vadd.f32 %v1164_v56, %v1140_v55 }
 0x1f4   :  { %v1009_v10 = vpop.f32.mrf.mxu2  ;;  %v1064_v63 = vpop.f32.mrf.mxu3 }
 0x1f5   :  { %v1029_v47 = vadd.f32 %v1028_v45, %v1009_v10  ;;  %1193 = vadd.xlane.f32.xlu2 %v1192_v52 }
 0x1f6   :  { %v974_v57 = vpop.f32.mrf.mxu0 }
 0x1f7   :  { %v1141_v58 = vmul.f32 %v1124_v29, %v1029_v47  ;;  %v994_v59 = vadd.f32 %v993_v53, %v974_v57 }
 0x1f9   :  { %v2531_v37 = vadd.f32 %v1164_v56, %v1141_v58  ;;  %v1144_v0 = vmul.f32 %v2521_v38, %v994_v59 }
 0x1fb   :  { %v1195_v35 = vadd.f32 %v2531_v37, %v2529_v60  ;;  %v2537_v9 = vadd.f32 %v1169_v49, %v1144_v0 }
 0x1fc   :  { %v1012_v61 = vpop.f32.mrf.mxu2  ;;  %v1066_v1 = vpop.f32.mrf.mxu3 }
 0x1fd   :  { %v1032_v62 = vadd.f32 %v1031_v26, %v1012_v61  ;;  %1196 = vadd.xlane.f32.xlu0 %v1195_v35 }
 0x1fe   :  { %v976_v7 = vpop.f32.mrf.mxu0 }
 0x1ff   :  { %v1145_v51 = vmul.f32 %v2521_v38, %v1032_v62  ;;  %v996_v15 = vadd.f32 %v995_v54, %v976_v7  ;;  %v1884_v54 = vmov 256.0  }
 0x200   :  { %1815 = vrcp.f32 %v1884_v54 }
 0x201   :  { %v2539_v11 = vadd.f32 %v1169_v49, %v1145_v51  ;;  %v1148_v17 = vmul.f32 %v1134_v36, %v996_v15 }
 0x203   :  { %v1198_v41 = vadd.f32 %v2539_v11, %v2537_v9  ;;  %v2555_v39 = vadd.f32 %v1174_v34, %v1148_v17 }
 0x204   :  { %v1014_v6 = vpop.f32.mrf.mxu2  ;;  %v1069_v24 = vpop.f32.mrf.mxu3 }
 0x205   :  { %1199 = vadd.xlane.f32.xlu2 %v1198_v41  ;;  %v1034_v23 = vadd.f32 %v1033_v44, %v1014_v6 }
 0x206   :  { %v1045_v25 = vpop.f32.mrf.mxu1 }
 0x207   :  { %v1083_v18 = vpop.f32.mrf.mxu0  ;;  %v1065_v8 = vadd.f32 %v1064_v63, %v1045_v25  ;;  %v1149_v31 = vmul.f32 %v1134_v36, %v1034_v23 }
 0x209   :  { %v1138_v4 = vmul.f32 %v1119_v16, %v1065_v8  ;;  %v2549_v32 = vadd.f32 %v1174_v34, %v1149_v31  ;;  %v1218_v31 = vld [vmem:[%s2696_s4 + $0x18] sm:$0xff] }
 0x20b   :  { %v2543_v50 = vadd.f32 %v1159_v5, %v1138_v4  ;;  %v1216_v4 = vld [vmem:[%s2696_s4 + $0x8] sm:$0xff] }
 0x20c   :  { %v1102_v19 = vpop.f32.mrf.mxu2  ;;  %v1071_v3 = vpop.f32.mrf.mxu3 }
 0x20d   :  { %v1103_v21 = vadd.f32 %v1102_v19, %v1083_v18 }
 0x20e   :  { %v1047_v22 = vpop.f32.mrf.mxu1 }
 0x20f   :  { %v1139_v2 = vmul.f32 %v1119_v16, %v1103_v21  ;;  %v1067_v48 = vadd.f32 %v1066_v1, %v1047_v22  ;;  %v1085_v46 = vpop.f32.mrf.mxu0 }
 0x211   :  { %v2545_v27 = vadd.f32 %v1159_v5, %v1139_v2  ;;  %v1142_v30 = vmul.f32 %v1124_v29, %v1067_v48  ;;  %v1201_v5 = vadd.f32 %v2549_v32, %v2555_v39  ;;  %v1215_v2 = vld [vmem:[%s2696_s4] sm:$0xff] }
 0x213   :  { %v1358_v33 = vadd.f32 %v2545_v27, %v2543_v50  ;;  %v2551_v12 = vadd.f32 %v1164_v56, %v1142_v30 }
 0x214   :  { %v1104_v13 = vpop.f32.mrf.mxu2 }
 0x215   :  { %v1105_v45 = vadd.f32 %v1104_v13, %v1085_v46  ;;  %1359 = vadd.xlane.f32.xlu1 %v1358_v33 }
 0x216   :  { %v1050_v16 = vpop.f32.mrf.mxu1 }
 0x217   :  { %v1143_v26 = vmul.f32 %v1124_v29, %v1105_v45  ;;  %v1070_v40 = vadd.f32 %v1069_v24, %v1050_v16  ;;  %v1107_v29 = vpop.f32.mrf.mxu3  ;;  %v1217_v24 = vld [vmem:[%s2696_s4 + $0x10] sm:$0xff] }
 0x219   :  { %v2553_v28 = vadd.f32 %v1164_v56, %v1143_v26  ;;  %v1146_v52 = vmul.f32 %v2521_v38, %v1070_v40 }
 0x21b   :  { %v1361_v42 = vadd.f32 %v2553_v28, %v2551_v12  ;;  %v2563_v55 = vadd.f32 %v1169_v49, %v1146_v52 }
 0x21d   :  { %1362 = vadd.xlane.f32.xlu2 %v1361_v42  ;;  %1202 = vadd.xlane.f32.xlu1 %v1201_v5 }
 0x21e   :  { %v1052_v20 = vpop.f32.mrf.mxu1 }
 0x21f   :  { %v1072_v47 = vadd.f32 %v1071_v3, %v1052_v20  ;;  %v1109_v59 = vpop.f32.mrf.mxu3 }
 0x221   :  { %v1150_v35 = vmul.f32 %v1134_v36, %v1072_v47 }
 0x223   :  { %v2569_v0 = vadd.f32 %v1174_v34, %v1150_v35  ;;  %v1238_v35 = vld [vmem:[%s2697_s5] sm:$0xff] }
 0x226   :  { %v1088_v44 = vpop.f32.mrf.mxu1 }
 0x227   :  { %v1108_v10 = vadd.f32 %v1107_v29, %v1088_v44 }
 0x229   :  { %v1147_v53 = vmul.f32 %v2521_v38, %v1108_v10 }
 0x22b   :  { %v2565_v56 = vadd.f32 %v1169_v49, %v1147_v53  ;;  %v1816_v49 = vpop.eup %1815 }
 0x22c   :  { %v1205_v51 = vmul.f32 256.0, %v1816_v49  ;;  %vm1209_vm10 = vweird.f32 %v1816_v49 }
 0x22d   :  { %v1364_v57 = vadd.f32 %v2565_v56, %v2563_v55 }
 0x22e   :  { %v1090_v58 = vpop.f32.mrf.mxu1  ;;  %v1206_v7 = vsub.f32 1.0, %v1205_v51 }
 0x22f   :  { %v1110_v61 = vadd.f32 %v1109_v59, %v1090_v58  ;;  %1365 = vadd.xlane.f32.xlu0 %v1364_v57  ;;  %v1240_v58 = vld [vmem:[%s2697_s5 + $0x10] sm:$0xff]  ;;  %v1239_v59 = vld [vmem:[%s2697_s5 + $0x8] sm:$0xff] }
 0x230   :  { %v1207_v41 = vmul.f32 %v1816_v49, %v1206_v7 }
 0x231   :  { %v1151_v63 = vmul.f32 %v1134_v36, %v1110_v61 }
 0x232   :  { %v1208_v25 = vadd.f32 %v1816_v49, %v1207_v41 }
 0x233   :  { %v2571_v62 = vadd.f32 %v1174_v34, %v1151_v63 }
 0x234   :  { %v1210_v18 = vsel %vm1209_vm10, %v1816_v49, %v1208_v25 }
 0x235   :  { %v1367_v38 = vadd.f32 %v2571_v62, %v2569_v0 }
 0x237   :  { %1368 = vadd.xlane.f32.xlu2 %v1367_v38 }
 0x268   :  { %v1194_v6 = vpop.xlane.xlu2 %1193 }
 0x269   :  { %v1211_v22 = vmul.f32 %v1210_v18, %v1194_v6 }
 0x26b   :  { %v1219_v48 = vmul.f32 %v1215_v2, %v1211_v22 }
 0x26d   :  { %v1224_v13 = vsel %vm1223_vm7, %v1219_v48, 0.0 }
 0x270   :  { %v1197_v1 = vpop.xlane.xlu0 %1196 }
 0x271   :  { %v1212_v19 = vmul.f32 %v1210_v18, %v1197_v1 }
 0x273   :  { %v1220_v15 = vmul.f32 %v1216_v4, %v1212_v19  ;;  %v1241_v19 = vld [vmem:[%s2697_s5 + $0x18] sm:$0xff] }
 0x275   :  { %v1225_v46 = vsel %vm1223_vm7, %v1220_v15, 0.0 }
 0x276   :  { %v1226_v17 = vadd.f32 %v1225_v46, %v1224_v13 }
 0x278   :  { %v1200_v8 = vpop.xlane.xlu2 %1199 }
 0x279   :  { %v1213_v23 = vmul.f32 %v1210_v18, %v1200_v8 }
 0x27b   :  { %v1221_v36 = vmul.f32 %v1217_v24, %v1213_v23 }
 0x27d   :  { %v1227_v30 = vsel %vm1223_vm7, %v1221_v36, 0.0 }
 0x27e   :  { %v1228_v16 = vadd.f32 %v1227_v30, %v1226_v17 }
 0x288   :  { %v1360_v21 = vpop.xlane.xlu1 %1359 }
 0x289   :  { %v1370_v47 = vmul.f32 %v1360_v21, %v1210_v18 }
 0x28b   :  { %v1378_v51 = vmul.f32 %v1370_v47, %v1215_v2 }
 0x290   :  { %v1203_v33 = vpop.xlane.xlu1 %1202  ;;  %v1363_v40 = vpop.xlane.xlu2 %1362 }
 0x291   :  { %v1214_v45 = vmul.f32 %v1210_v18, %v1203_v33  ;;  %v1371_v52 = vmul.f32 %v1363_v40, %v1210_v18 }
 0x293   :  { %v1222_v34 = vmul.f32 %v1218_v31, %v1214_v45  ;;  %v1379_v63 = vmul.f32 %v1371_v52, %v1216_v4  ;;  %v1382_v4 = vsel %vm1223_vm7, %v1378_v51, 0.0 }
 0x295   :  { %v1229_v26 = vsel %vm1223_vm7, %v1222_v34, 0.0  ;;  %v1383_v1 = vsel %vm1223_vm7, %v1379_v63, 0.0 }
 0x296   :  { %v1230_v3 = vadd.f32 %v1229_v26, %v1228_v16  ;;  %v1384_v23 = vadd.f32 %v1383_v1, %v1382_v4 }
 0x298   :  { %v1231_v42 = vrot.slane %v1230_v3, 4 }
 0x29a   :  { %v1232_v5 = vadd.f32 %v1231_v42, %v1230_v3 }
 0x29c   :  { %v1233_v20 = vrot.slane %v1232_v5, 2 }
 0x29e   :  { %v1234_v29 = vadd.f32 %v1233_v20, %v1232_v5 }
 0x2a0   :  { %v1235_v44 = vrot.slane %v1234_v29, 1 }
 0x2a2   :  { %v1366_v10 = vpop.xlane.xlu0 %1365  ;;  %v1236_v53 = vadd.f32 %v1235_v44, %v1234_v29 }
 0x2a3   :  { %v1372_v57 = vmul.f32 %v1366_v10, %v1210_v18 }
 0x2a4   :  { %v1237_v61 = vmax.f32 %v1236_v53, 0.0 }
 0x2a5   :  { %v1380_v7 = vmul.f32 %v1372_v57, %v1217_v24 }
 0x2a6   :  { %v1244_v38 = vmul.f32 %v1240_v58, %v1237_v61  ;;  %v1243_v54 = vmul.f32 %v1239_v59, %v1237_v61  ;;  %v1242_v49 = vmul.f32 %v1238_v35, %v1237_v61  ;;  %v1245_v24 = vmul.f32 %v1241_v19, %v1237_v61 }
 0x2a7   :  { %v1385_v21 = vsel %vm1223_vm7, %v1380_v7, 0.0 }
 0x2a8   :  { %v1252_v41 = vsel %vm1223_vm7, %v1244_v38, 0.0  ;;  %v1249_v6 = vsel %vm1223_vm7, %v1243_v54, 0.0  ;;  %v1246_v25 = vsel %vm1223_vm7, %v1242_v49, 0.0  ;;  %v1386_v15 = vadd.f32 %v1385_v21, %v1384_v23 }
 0x2a9   :  { %1253 = vadd.xlane.f32.xlu2 %v1252_v41  ;;  %1250 = vadd.xlane.f32.xlu1 %v1249_v6  ;;  %v1255_v46 = vsel %vm1223_vm7, %v1245_v24, 0.0 }
 0x2aa   :  { %1247 = vadd.xlane.f32.xlu0 %v1246_v25  ;;  %v1369_v8 = vpop.xlane.xlu2 %1368 }
 0x2ab   :  { %v1373_v22 = vmul.f32 %v1369_v8, %v1210_v18 }
 0x2ad   :  { %v1381_v2 = vmul.f32 %v1373_v22, %v1218_v31 }
 0x2af   :  { %v1387_v48 = vsel %vm1223_vm7, %v1381_v2, 0.0 }
 0x2b0   :  { %v1388_v36 = vadd.f32 %v1387_v48, %v1386_v15 }
 0x2b2   :  { %v1389_v33 = vrot.slane %v1388_v36, 4  ;;  %1256 = vadd.xlane.f32.xlu0 %v1255_v46 }
 0x2b4   :  { %v1390_v13 = vadd.f32 %v1389_v33, %v1388_v36 }
 0x2b6   :  { %v1391_v30 = vrot.slane %v1390_v13, 2 }
 0x2b8   :  { %v1392_v45 = vadd.f32 %v1391_v30, %v1390_v13 }
 0x2ba   :  { %v1393_v17 = vrot.slane %v1392_v45, 1 }
 0x2bc   :  { %v1394_v34 = vadd.f32 %v1393_v17, %v1392_v45 }
 0x2be   :  { %v1395_v16 = vmax.f32 %v1394_v34, 0.0 }
 0x2c0   :  { %v1401_v26 = vmul.f32 %v1395_v16, %v1239_v59  ;;  %v1400_v3 = vmul.f32 %v1395_v16, %v1238_v35  ;;  %v1402_v18 = vmul.f32 %v1395_v16, %v1240_v58  ;;  %v1403_v20 = vmul.f32 %v1395_v16, %v1241_v19 }
 0x2c2   :  { %v1407_v31 = vsel %vm1223_vm7, %v1401_v26, 0.0  ;;  %v1404_v42 = vsel %vm1223_vm7, %v1400_v3, 0.0  ;;  %v1410_v5 = vsel %vm1223_vm7, %v1402_v18, 0.0  ;;  %v1413_v40 = vsel %vm1223_vm7, %v1403_v20, 0.0 }
 0x2c3   :  { %1408 = vadd.xlane.f32.xlu2 %v1407_v31  ;;  %1405 = vadd.xlane.f32.xlu1 %v1404_v42 }
 0x2c4   :  { %1411 = vadd.xlane.f32.xlu0 %v1410_v5 }
 0x2cb   :  { %1414 = vadd.xlane.f32.xlu1 %v1413_v40 }
 0x31c   :  { %v1254_v29 = vpop.xlane.xlu2 %1253  ;;  %v1251_v44 = vpop.xlane.xlu1 %1250 }
 0x31d   :  { %v1705_v52 = vmul.f32 -1.442695, %v1254_v29  ;;  %v1704_v10 = vmul.f32 -1.442695, %v1251_v44  ;;  %v1248_v53 = vpop.xlane.xlu0 %1247 }
 0x31e   :  { %v1703_v47 = vmul.f32 -1.442695, %v1248_v53 }
 0x31f   :  { %1817 = vpow2.f32 %v1705_v52 }
 0x320   :  { %1819 = vpow2.f32 %v1704_v10 }
 0x321   :  { %1821 = vpow2.f32 %v1703_v47 }
 0x325   :  { %v1818_v57 = vpop.eup %1817  ;;  %v1257_v58 = vpop.xlane.xlu0 %1256 }
 0x326   :  { %v1820_v59 = vpop.eup %1819  ;;  %v1272_v35 = vadd.f32 1.0, %v1818_v57  ;;  %v1706_v61 = vmul.f32 -1.442695, %v1257_v58 }
 0x327   :  { %v1822_v63 = vpop.eup %1821  ;;  %v1271_v38 = vadd.f32 1.0, %v1820_v59 }
 0x328   :  { %1823 = vrcp.f32 %v1272_v35  ;;  %v1270_v54 = vadd.f32 1.0, %v1822_v63  ;;  %vm1309_vm5 = vweird.f32 %v1272_v35  ;;  %v1313_v6 = vand.u32 2147483647, %v1272_v35 }
 0x329   :  { %1825 = vrcp.f32 %v1271_v38  ;;  %v1315_v8 = vand.u32 2147483648, %v1272_v35  ;;  %v1298_v19 = vand.u32 2147483647, %v1271_v38  ;;  %vm1294_vm0 = vweird.f32 %v1271_v38 }
 0x32a   :  { %1827 = vpow2.f32 %v1706_v61  ;;  %v1300_v23 = vand.u32 2147483648, %v1271_v38  ;;  %v1283_v2 = vand.u32 2147483647, %v1270_v54  ;;  %vm2618_vm14 = vcmp.eq.f32.partialorder %v1313_v6, 8.507059e+37 }
 0x32b   :  { %1829 = vrcp.f32 %v1270_v54  ;;  %v1285_v46 = vand.u32 2147483648, %v1270_v54  ;;  %v1316_v13 = vor.u32 1.1754944e-38, %v1315_v8  ;;  %vm2622_vm13 = vcmp.eq.f32.partialorder %v1298_v19, 8.507059e+37 }
 0x32c   :  { %v1301_v34 = vor.u32 1.1754944e-38, %v1300_v23  ;;  %vm1279_vm4 = vweird.f32 %v1270_v54  ;;  %vm2627_vm12 = vcmp.eq.f32.partialorder %v1283_v2, 8.507059e+37 }
 0x32d   :  { %v1286_v29 = vor.u32 1.1754944e-38, %v1285_v46 }
 0x32e   :  { %v1824_v49 = vpop.eup %1823 }
 0x32f   :  { %v1826_v51 = vpop.eup %1825  ;;  %v1305_v7 = vmul.f32 %v1824_v49, %v1272_v35  ;;  %vm1310_vm3 = vweird.f32 %v1824_v49 }
 0x330   :  { %v1828_v41 = vpop.eup %1827  ;;  %v1290_v25 = vmul.f32 %v1826_v51, %v1271_v38  ;;  %vm1295_vm8 = vweird.f32 %v1826_v51  ;;  %vm1311_vm15 = vmor %vm1309_vm5, %vm1310_vm3 }
 0x331   :  { %v1306_v1 = vsub.f32 1.0, %v1305_v7  ;;  %v2615_v4 = vadd.f32 1.0, %v1828_v41  ;;  %v1830_v21 = vpop.eup %1829  ;;  %vm1296_vm11 = vmor %vm1294_vm0, %vm1295_vm8 }
 0x332   :  { %v1291_v22 = vsub.f32 1.0, %v1290_v25  ;;  %v1275_v15 = vmul.f32 %v1830_v21, %v1270_v54  ;;  %vm1280_vm1 = vweird.f32 %v1830_v21 }
 0x333   :  { %v1307_v24 = vmul.f32 %v1824_v49, %v1306_v1  ;;  %1831 = vrcp.f32 %v2615_v4  ;;  %vm1281_vm6 = vmor %vm1279_vm4, %vm1280_vm1  ;;  %v1330_v54 = vand.u32 2147483648, %v2615_v4  ;;  %v1328_v6 = vand.u32 2147483647, %v2615_v4 }
 0x334   :  { %v1292_v36 = vmul.f32 %v1826_v51, %v1291_v22  ;;  %v1276_v45 = vsub.f32 1.0, %v1275_v15  ;;  %vm1324_vm2 = vweird.f32 %v2615_v4 }
 0x335   :  { %v1308_v33 = vadd.f32 %v1824_v49, %v1307_v24  ;;  %vm1329_vm7 = vcmp.eq.f32.partialorder %v1328_v6, 8.507059e+37 }
 0x336   :  { %v1293_v17 = vadd.f32 %v1826_v51, %v1292_v36  ;;  %v1409_v26 = vpop.xlane.xlu2 %1408  ;;  %v1406_v3 = vpop.xlane.xlu1 %1405  ;;  %v1277_v31 = vmul.f32 %v1830_v21, %v1276_v45 }
 0x337   :  { %v1312_v18 = vsel %vm1311_vm15, %v1824_v49, %v1308_v33  ;;  %v1708_v42 = vmul.f32 -1.442695, %v1409_v26  ;;  %v1412_v5 = vpop.xlane.xlu0 %1411  ;;  %v1707_v44 = vmul.f32 -1.442695, %v1406_v3 }
 0x338   :  { %v1317_v20 = vsel %vm2618_vm14, %v1316_v13, %v1312_v18  ;;  %v1297_v40 = vsel %vm1296_vm11, %v1826_v51, %v1293_v17  ;;  %v1278_v57 = vadd.f32 %v1830_v21, %v1277_v31  ;;  %v1709_v61 = vmul.f32 -1.442695, %v1412_v5 }
 0x339   :  { %v1832_v52 = vpop.eup %1831  ;;  %v1338_v10 = vmul.f32 %v1317_v20, %v2537_v9  ;;  %v1339_v53 = vmul.f32 %v1317_v20, %v2539_v11  ;;  %v1302_v47 = vsel %vm2622_vm13, %v1301_v34, %v1297_v40  ;;  %1833 = vpow2.f32 %v1708_v42 }
 0x33a   :  { %v1336_v58 = vmul.f32 %v1302_v47, %v2529_v60  ;;  %v1337_v59 = vmul.f32 %v1302_v47, %v2531_v37  ;;  %v1320_v35 = vmul.f32 %v1832_v52, %v2615_v4  ;;  %v1282_v49 = vsel %vm1281_vm6, %v1830_v21, %v1278_v57 }
 0x33b   :  { %v1346_v63 = vmax.f32 %v1338_v10, 0.0  ;;  %v1347_v38 = vmax.f32 %v1339_v53, 0.0  ;;  %v1287_v11 = vsel %vm2627_vm12, %v1286_v29, %v1282_v49  ;;  %1835 = vpow2.f32 %v1707_v44 }
 0x33c   :  { %v1344_v9 = vmax.f32 %v1336_v58, 0.0  ;;  %v1345_v51 = vmax.f32 %v1337_v59, 0.0  ;;  %v1321_v7 = vsub.f32 1.0, %v1320_v35  ;;  %v1334_v60 = vmul.f32 %v1287_v11, %v2523_v14 }
 0x33d   :  { %1354 = vst [vmem:[#allocation4 + $0x20] sm:$0xff] %v1346_v63  ;;  %v1335_v37 = vmul.f32 %v1287_v11, %v2525_v43  ;;  %vm1325_vm9 = vweird.f32 %v1832_v52  ;;  %1837 = vpow2.f32 %v1709_v61  ;;  %v1331_v43 = vor.u32 1.1754944e-38, %v1330_v54 }
 0x33e   :  { %1355 = vst [vmem:[#allocation4 + $0x28] sm:$0xff] %v1347_v38  ;;  %v1322_v41 = vmul.f32 %v1832_v52, %v1321_v7  ;;  %v1415_v25 = vpop.xlane.xlu1 %1414  ;;  %v1342_v1 = vmax.f32 %v1334_v60, 0.0  ;;  %vm1326_vm10 = vmor %vm1324_vm2, %vm1325_vm9 }
 0x33f   :  { %1352 = vst [vmem:[#allocation4 + $0x10] sm:$0xff] %v1344_v9  ;;  %v1343_v8 = vmax.f32 %v1335_v37, 0.0  ;;  %v1710_v19 = vmul.f32 -1.442695, %v1415_v25  ;;  %v1834_v14 = vpop.eup %1833 }
 0x340   :  { %1353 = vst [vmem:[#allocation4 + $0x18] sm:$0xff] %v1345_v51  ;;  %v1323_v21 = vadd.f32 %v1832_v52, %v1322_v41  ;;  %v1429_v23 = vadd.f32 1.0, %v1834_v14 }
 0x341   :  { %1350 = vst [vmem:[#allocation4] sm:$0xff] %v1342_v1  ;;  %1839 = vpow2.f32 %v1710_v19  ;;  %v1836_v2 = vpop.eup %1835 }
 0x342   :  { %1351 = vst [vmem:[#allocation4 + $0x8] sm:$0xff] %v1343_v8  ;;  %v1327_v22 = vsel %vm1326_vm10, %v1832_v52, %v1323_v21  ;;  %1841 = vrcp.f32 %v1429_v23  ;;  %v1428_v46 = vadd.f32 1.0, %v1836_v2  ;;  %v1456_v16 = vand.u32 2147483647, %v1429_v23 }
 0x343   :  { %v1332_v24 = vsel %vm1329_vm7, %v1331_v43, %v1327_v22  ;;  %v1838_v15 = vpop.eup %1837  ;;  %v1458_v26 = vand.u32 2147483648, %v1429_v23  ;;  %vm1452_vm5 = vweird.f32 %v1429_v23 }
 0x344   :  { %v1340_v48 = vmul.f32 %v1332_v24, %v2555_v39  ;;  %v1341_v36 = vmul.f32 %v1332_v24, %v2549_v32  ;;  %v1430_v33 = vadd.f32 1.0, %v1838_v15  ;;  %1843 = vrcp.f32 %v1428_v46 }
 0x345   :  { %v1441_v31 = vand.u32 2147483647, %v1428_v46  ;;  %v1443_v42 = vand.u32 2147483648, %v1428_v46  ;;  %vm2654_vm3 = vcmp.eq.f32.partialorder %v1456_v16, 8.507059e+37  ;;  %v1459_v29 = vor.u32 1.1754944e-38, %v1458_v26 }
 0x346   :  { %v1348_v4 = vmax.f32 %v1340_v48, 0.0  ;;  %v1349_v13 = vmax.f32 %v1341_v36, 0.0  ;;  %1845 = vrcp.f32 %v1430_v33  ;;  %v1471_v52 = vand.u32 2147483647, %v1430_v33 }
 0x347   :  { %v1840_v30 = vpop.eup %1839  ;;  %v1473_v10 = vand.u32 2147483648, %v1430_v33  ;;  %vm1437_vm14 = vweird.f32 %v1428_v46  ;;  %vm1467_vm8 = vweird.f32 %v1430_v33  ;;  %vm2659_vm4 = vcmp.eq.f32.partialorder %v1441_v31, 8.507059e+37 }
 0x348   :  { %1356 = vst [vmem:[#allocation4 + $0x30] sm:$0xff] %v1348_v4  ;;  %v2651_v45 = vadd.f32 1.0, %v1840_v30  ;;  %v1842_v17 = vpop.eup %1841  ;;  %v1444_v35 = vor.u32 1.1754944e-38, %v1443_v42  ;;  %vm2666_vm11 = vcmp.eq.f32.partialorder %v1471_v52, 8.507059e+37 }
 0x349   :  { %1357 = vst [vmem:[#allocation4 + $0x38] sm:$0xff] %v1349_v13  ;;  %v1448_v34 = vmul.f32 %v1842_v17, %v1429_v23  ;;  %vm1453_vm0 = vweird.f32 %v1842_v17  ;;  %v1474_v11 = vor.u32 1.1754944e-38, %v1473_v10 }
 0x34a   :  { %1847 = vrcp.f32 %v2651_v45  ;;  %v1844_v39 = vpop.eup %1843  ;;  %vm1454_vm13 = vmor %vm1452_vm5, %vm1453_vm0  ;;  %v1486_v6 = vand.u32 2147483647, %v2651_v45  ;;  %v1488_v25 = vand.u32 2147483648, %v2651_v45  ;;  %vm1482_vm2 = vweird.f32 %v2651_v45 }
 0x34b   :  { %v1449_v32 = vsub.f32 1.0, %v1448_v34  ;;  %v1433_v18 = vmul.f32 %v1844_v39, %v1428_v46  ;;  %vm1438_vm15 = vweird.f32 %v1844_v39 }
 0x34c   :  { %v1846_v3 = vpop.eup %1845  ;;  %vm1439_vm1 = vmor %vm1437_vm14, %vm1438_vm15  ;;  %vm1487_vm7 = vcmp.eq.f32.partialorder %v1486_v6, 8.507059e+37 }
 0x34d   :  { %v1450_v5 = vmul.f32 %v1842_v17, %v1449_v32  ;;  %v1463_v40 = vmul.f32 %v1846_v3, %v1430_v33  ;;  %v1434_v44 = vsub.f32 1.0, %v1433_v18  ;;  %vm1468_vm12 = vweird.f32 %v1846_v3 }
 0x34e   :  { %vm1469_vm6 = vmor %vm1467_vm8, %vm1468_vm12 }
 0x34f   :  { %v1451_v53 = vadd.f32 %v1842_v17, %v1450_v5  ;;  %v1464_v47 = vsub.f32 1.0, %v1463_v40  ;;  %v1435_v58 = vmul.f32 %v1844_v39, %v1434_v44 }
 0x350   :  { %v1848_v57 = vpop.eup %1847 }
 0x351   :  { %v1455_v61 = vsel %vm1454_vm13, %v1842_v17, %v1451_v53  ;;  %v1465_v63 = vmul.f32 %v1846_v3, %v1464_v47  ;;  %v1478_v38 = vmul.f32 %v1848_v57, %v2651_v45  ;;  %v1436_v9 = vadd.f32 %v1844_v39, %v1435_v58 }
 0x352   :  { %v1460_v49 = vsel %vm2654_vm3, %v1459_v29, %v1455_v61  ;;  %vm1483_vm9 = vweird.f32 %v1848_v57 }
 0x353   :  { %v1494_v7 = vmul.f32 %v1460_v49, %v2551_v12  ;;  %v1495_v60 = vmul.f32 %v1460_v49, %v2553_v28  ;;  %v1466_v37 = vadd.f32 %v1846_v3, %v1465_v63  ;;  %v1479_v54 = vsub.f32 1.0, %v1478_v38  ;;  %vm1484_vm10 = vmor %vm1482_vm2, %vm1483_vm9 }
 0x354   :  { %v1440_v41 = vsel %vm1439_vm1, %v1844_v39, %v1436_v9 }
 0x355   :  { %v1502_v1 = vmax.f32 %v1494_v7, 0.0  ;;  %v1503_v8 = vmax.f32 %v1495_v60, 0.0  ;;  %v1445_v19 = vsel %vm2659_vm4, %v1444_v35, %v1440_v41  ;;  %v1470_v12 = vsel %vm1469_vm6, %v1846_v3, %v1466_v37 }
 0x356   :  { %v1492_v28 = vmul.f32 %v1445_v19, %v2543_v50  ;;  %v1493_v21 = vmul.f32 %v1445_v19, %v2545_v27  ;;  %v1475_v14 = vsel %vm2666_vm11, %v1474_v11, %v1470_v12  ;;  %v1480_v43 = vmul.f32 %v1848_v57, %v1479_v54 }
 0x357   :  { %1511 = vst [vmem:[#allocation4 + $0x50] sm:$0xff] %v1502_v1  ;;  %v1496_v22 = vmul.f32 %v1475_v14, %v2563_v55  ;;  %v1497_v23 = vmul.f32 %v1475_v14, %v2565_v56  ;;  %v1489_v50 = vor.u32 1.1754944e-38, %v1488_v25 }
 0x358   :  { %1512 = vst [vmem:[#allocation4 + $0x58] sm:$0xff] %v1503_v8  ;;  %v1500_v2 = vmax.f32 %v1492_v28, 0.0  ;;  %v1501_v24 = vmax.f32 %v1493_v21, 0.0  ;;  %v1481_v15 = vadd.f32 %v1848_v57, %v1480_v43 }
 0x359   :  { %v1504_v48 = vmax.f32 %v1496_v22, 0.0  ;;  %v1505_v36 = vmax.f32 %v1497_v23, 0.0 }
 0x35a   :  { %1509 = vst [vmem:[#allocation4 + $0x40] sm:$0xff] %v1500_v2  ;;  %v1485_v27 = vsel %vm1484_vm10, %v1848_v57, %v1481_v15 }
 0x35b   :  { %1510 = vst [vmem:[#allocation4 + $0x48] sm:$0xff] %v1501_v24  ;;  %v1490_v46 = vsel %vm1487_vm7, %v1489_v50, %v1485_v27 }
 0x35c   :  { %1513 = vst [vmem:[#allocation4 + $0x60] sm:$0xff] %v1504_v48  ;;  %v1498_v55 = vmul.f32 %v1490_v46, %v2569_v0  ;;  %v1499_v56 = vmul.f32 %v1490_v46, %v2571_v62 }
 0x35d   :  { %1514 = vst [vmem:[#allocation4 + $0x68] sm:$0xff] %v1505_v36 }
 0x35e   :  { %v1506_v33 = vmax.f32 %v1498_v55, 0.0  ;;  %v1507_v4 = vmax.f32 %v1499_v56, 0.0 }
 0x360   :  { %1515 = vst [vmem:[#allocation4 + $0x70] sm:$0xff] %v1506_v33 }
 0x361   :  { %1516 = vst [vmem:[#allocation4 + $0x78] sm:$0xff] %v1507_v4 }
 0x362   :  { %1529 = dma.vmem_to_hbm [thread:$0]  %s1522_s18, 2048, %s1524_s17, [#allocation5], %s1886_s20, %s1886_s20, %s1883_s19  }
 0x363   :  { %1873 = dma.done.wait [#allocation5], 2048  }
 0x364   :  { %1874 = vsyncadd [#allocation5], 4294965248 }
 0x365   :  { %1534 = vsyncpa [#allocation5], 1 }

</bundles_post_ra>
